<compile_context>
chip_gen: v7x
topology: tpu7x:2x2x1
jax: 0.10.0
libtpu: 0.0.40
codegen_flags: <defaults>
</compile_context>

<pallas_src>
import jax
import jax.numpy as jnp
import numpy as np
from jax.experimental import pallas as pl
from jax.experimental.pallas import tpu as pltpu

H = 32          # encoder hidden size
HD = H + 1      # decoder hidden size (33)
HP = 64         # decoder hidden size padded to a lane-friendly width


def _lstm_gate_update(g_all, c, Hn):
    """LSTM cell update from stacked pre-activations (gate order i, f, g, o).

    Activations are applied to the WHOLE gate vector (2 full-vector tanh issues:
    sigmoid(x) = 0.5*tanh(0.5*x)+0.5), then sliced with static lane offsets.
    """
    sig = 0.5 * jnp.tanh(0.5 * g_all) + 0.5
    tnh = jnp.tanh(g_all)
    i = sig[:, 0 * Hn:1 * Hn]
    f = sig[:, 1 * Hn:2 * Hn]
    g = tnh[:, 2 * Hn:3 * Hn]
    o = sig[:, 3 * Hn:4 * Hn]
    c_new = f * c + i * g
    h_new = o * jnp.tanh(c_new)
    return h_new, c_new


def seq2seq_kernel(x_ref, speed_ref, enc_ref, dec_ref, out_ref):
    T, B, _ = x_ref.shape
    target_len = out_ref.shape[0]
    f32 = jnp.float32

    # ---------------- encoder LSTM (zero-initialized state) ----------------
    # enc_ref layout: row 0 = w_ih (input weight row), row 1 = b_ih+b_hh,
    #                 rows 8:8+H = w_hh (gate-stacked, transposed).
    # Input-side contributions + bias for ALL timesteps, computed once off the
    # serial chain (input_size == 1 -> pure broadcast multiply).
    inp_e = x_ref[...] * enc_ref[0:1, :] + enc_ref[1:2, :]          # (T, B, 4H)
    whh_e = enc_ref[8:8 + H, :]                                     # (H, 4H)

    h = jnp.zeros((B, H), f32)
    c = jnp.zeros((B, H), f32)
    for t in range(T):                                              # static unroll
        g_all = inp_e[t] + jnp.dot(h, whh_e, preferred_element_type=f32)
        h, c = _lstm_gate_update(g_all, c, H)

    # ---------------- speed dense: Linear(1, 1) ----------------
    # dec_ref row 3: lane 0 = w_dense, lane 1 = b_dense, lane 2 = b_lin.
    wdense = dec_ref[3:4, 0:1]                                      # (1, 1)
    bdense = dec_ref[3:4, 1:2]
    blin = dec_ref[3:4, 2:3]
    sp = speed_ref[...] * wdense + bdense                           # (B, 1)

    # ---------------- decoder init: concat (h, speed) + zero pad ----------------
    pad = HP - HD
    h_d = jnp.concatenate([h, sp, jnp.zeros((B, pad), f32)], axis=-1)   # (B, HP)
    c_d = jnp.concatenate([c, sp, jnp.zeros((B, pad), f32)], axis=-1)   # (B, HP)

    # dec_ref layout: row 0 = bd, row 1 = bd_eff, row 2[:HP] = w_lin (padded),
    #                 rows 8:8+HP = whh_d, rows 8+HP:8+2HP = whh_eff.
    bd_b = jnp.broadcast_to(dec_ref[0:1, :], (B, 4 * HP))           # hoisted
    bdeff_b = jnp.broadcast_to(dec_ref[1:2, :], (B, 4 * HP))        # hoisted
    wlin = dec_ref[2:3, 0:HP]                                       # (1, HP)
    whh_d = dec_ref[8:8 + HP, :]                                    # (HP, 4HP)
    whh_eff = dec_ref[8 + HP:8 + 2 * HP, :]                         # (HP, 4HP)

    # ---------------- autoregressive decoder (feedback folded into whh_eff) ----------------
    hs = []
    # step 0: decoder_input = 0 -> plain recurrence with unfolded weights/bias.
    g_all = bd_b + jnp.dot(h_d, whh_d, preferred_element_type=f32)
    h_d, c_d = _lstm_gate_update(g_all, c_d, HP)
    hs.append(h_d)
    # steps 1..T-1: din_t = w_lin . h_{t-1} + b_lin is absorbed into whh_eff / bd_eff.
    for t in range(1, target_len):                                  # static unroll
        g_all = bdeff_b + jnp.dot(h_d, whh_eff, preferred_element_type=f32)
        h_d, c_d = _lstm_gate_update(g_all, c_d, HP)
        hs.append(h_d)

    # ---------------- output projection: once for all steps, single store ----------------
    hs_all = jnp.stack(hs, axis=0)                                  # (target_len, B, HP)
    preds = jnp.sum(hs_all * wlin, axis=-1, keepdims=True) + blin   # (target_len, B, 1)
    out_ref[...] = preds


# -------------------- one-time parameter packing (outside the kernel) --------------------
def _pack_lstm(w_ih, w_hh, b_ih, b_hh, hidden, hidden_pad):
    """PyTorch LSTM params -> gate-stacked, transposed, zero-padded tensors.

    Returns:
      wih: (input_size, 4*hidden_pad)
      whh: (hidden_pad, 4*hidden_pad)
      b:   (1, 4*hidden_pad)   (= b_ih + b_hh)
    Gate k (PyTorch order i, f, g, o) occupies columns
    [k*hidden_pad : k*hidden_pad + hidden]; all padded entries are exactly zero.
    """
    in_size = w_ih.shape[1]
    wih = jnp.zeros((in_size, 4 * hidden_pad), jnp.float32)
    whh = jnp.zeros((hidden_pad, 4 * hidden_pad), jnp.float32)
    b = jnp.zeros((1, 4 * hidden_pad), jnp.float32)
    bsum = b_ih + b_hh
    for k in range(4):
        src = slice(k * hidden, (k + 1) * hidden)
        dst = slice(k * hidden_pad, k * hidden_pad + hidden)
        wih = wih.at[:, dst].set(w_ih[src, :].T)
        whh = whh.at[:hidden, dst].set(w_hh[src, :].T)
        b = b.at[:, dst].set(bsum[src][None, :])
    return wih, whh, b


def pack_params(params):
    """Pack all weights into 2 tile-aligned VMEM slabs.  Call ONCE at init."""
    assert params["H"] == H
    wih_e, whh_e, be = _pack_lstm(params["w_ih_e"], params["w_hh_e"],
                                  params["b_ih_e"], params["b_hh_e"], H, H)
    wih_d, whh_d, bd = _pack_lstm(params["w_ih_d"], params["w_hh_d"],
                                  params["b_ih_d"], params["b_hh_d"], HD, HP)

    # Fold decoder output projection + autoregressive feedback into the recurrence
    # (computed in f32; padded rows/cols of the rank-1 update are exactly zero, so
    # the padded-channels-stay-zero invariant of the decoder state is preserved).
    wlin_pad = jnp.zeros((1, HP), jnp.float32).at[:, :HD].set(params["w_lin"])
    whh_eff = whh_d + wlin_pad.T @ wih_d                       # (HP, 1) @ (1, 4HP)
    bd_eff = bd + params["b_lin"][0] * wih_d                   # (1, 4HP)

    # encoder slab (40, 128): rows 0 = w_ih, 1 = bias, 8:8+H = w_hh
    enc_slab = jnp.zeros((8 + H, 4 * H), jnp.float32)
    enc_slab = enc_slab.at[0:1, :].set(wih_e)
    enc_slab = enc_slab.at[1:2, :].set(be)
    enc_slab = enc_slab.at[8:8 + H, :].set(whh_e)

    # decoder slab (136, 256): rows 0 = bd, 1 = bd_eff, 2[:HP] = w_lin(padded),
    # row 3 = [w_dense, b_dense, b_lin, 0...], 8:8+HP = whh_d, 8+HP:8+2HP = whh_eff
    dec_slab = jnp.zeros((8 + 2 * HP, 4 * HP), jnp.float32)
    dec_slab = dec_slab.at[0:1, :].set(bd)
    dec_slab = dec_slab.at[1:2, :].set(bd_eff)
    dec_slab = dec_slab.at[2:3, 0:HP].set(wlin_pad)
    dec_slab = dec_slab.at[3, 0].set(params["w_dense"][0, 0])
    dec_slab = dec_slab.at[3, 1].set(params["b_dense"][0])
    dec_slab = dec_slab.at[3, 2].set(params["b_lin"][0])
    dec_slab = dec_slab.at[8:8 + HP, :].set(whh_d)
    dec_slab = dec_slab.at[8 + HP:8 + 2 * HP, :].set(whh_eff)

    return enc_slab, dec_slab


def lstm_seq2seq_with_speed_forward(x, speed, packed, target_len):
    enc_slab, dec_slab = packed
    seq_len, batch, in_size = x.shape
    # The in-kernel `x_t * w_ih` broadcast is a matmul ONLY because input_size == 1.
    assert in_size == 1, "kernel assumes input_size == 1"

    vmem = pl.BlockSpec(memory_space=pltpu.MemorySpace.VMEM)
    return pl.pallas_call(
        seq2seq_kernel,
        out_shape=jax.ShapeDtypeStruct((target_len, batch, 1), jnp.float32),
        in_specs=[vmem, vmem, vmem, vmem],
        out_specs=vmem,
    )(x, speed, enc_slab, dec_slab)


# -------------------- deterministic parameter construction --------------------
def make_params(key, input_size=1, hidden_size=32):
    Hs = hidden_size
    Hd = Hs + 1
    ks = jax.random.split(key, 12)

    def u(k, shape, fan):
        bound = 1.0 / np.sqrt(fan)
        return jax.random.uniform(k, shape, jnp.float32, -bound, bound)

    params = dict(
        H=Hs,
        # encoder LSTM: nn.LSTM(input_size, H)
        w_ih_e=u(ks[0], (4 * Hs, input_size), Hs),
        w_hh_e=u(ks[1], (4 * Hs, Hs), Hs),
        b_ih_e=u(ks[2], (4 * Hs,), Hs),
        b_hh_e=u(ks[3], (4 * Hs,), Hs),
        # speed dense: nn.Linear(1, 1)
        w_dense=u(ks[4], (1, 1), 1),
        b_dense=u(ks[5], (1,), 1),
        # decoder LSTM: nn.LSTM(1, H + 1)
        w_ih_d=u(ks[6], (4 * Hd, 1), Hd),
        w_hh_d=u(ks[7], (4 * Hd, Hd), Hd),
        b_ih_d=u(ks[8], (4 * Hd,), Hd),
        b_hh_d=u(ks[9], (4 * Hd,), Hd),
        # decoder output linear: nn.Linear(H + 1, 1)
        w_lin=u(ks[10], (1, Hd), Hd),
        b_lin=u(ks[11], (1,), Hd),
    )
    return params


# -------------------- pure-JAX f32 reference (for correctness check) --------------------
def _lstm_cell_ref(x_t, h, c, w_ih, w_hh, b_ih, b_hh, Hn):
    gates = x_t @ w_ih.T + h @ w_hh.T + b_ih + b_hh
    i = jax.nn.sigmoid(gates[:, 0:Hn])
    f = jax.nn.sigmoid(gates[:, Hn:2 * Hn])
    g = jnp.tanh(gates[:, 2 * Hn:3 * Hn])
    o = jax.nn.sigmoid(gates[:, 3 * Hn:4 * Hn])
    c_new = f * c + i * g
    h_new = o * jnp.tanh(c_new)
    return h_new, c_new


def reference_forward(x, speed, params, target_len):
    seq_len, batch, _ = x.shape
    Hs = params["H"]
    Hd = Hs + 1
    h = jnp.zeros((batch, Hs), jnp.float32)
    c = jnp.zeros((batch, Hs), jnp.float32)
    for t in range(seq_len):
        h, c = _lstm_cell_ref(x[t], h, c, params["w_ih_e"], params["w_hh_e"],
                              params["b_ih_e"], params["b_hh_e"], Hs)
    sp = speed @ params["w_dense"].T + params["b_dense"]
    hd = jnp.concatenate([h, sp], axis=-1)
    cd = jnp.concatenate([c, sp], axis=-1)
    din = jnp.zeros((batch, 1), jnp.float32)
    outs = []
    for _ in range(target_len):
        hd, cd = _lstm_cell_ref(din, hd, cd, params["w_ih_d"], params["w_hh_d"],
                                params["b_ih_d"], params["b_hh_d"], Hd)
        pred = hd @ params["w_lin"].T + params["b_lin"]
        outs.append(pred)
        din = pred
    return jnp.stack(outs, axis=0)


if __name__ == "__main__":
    key = jax.random.PRNGKey(0)
    k_x, k_sp, k_p = jax.random.split(key, 3)

    seq_len, batch, input_size = 8, 2, 1
    hidden_size = 32
    target_len = 8

    x = jax.random.normal(k_x, (seq_len, batch, input_size), jnp.float32)   # accelerations
    speed = jax.random.normal(k_sp, (batch, 1), jnp.float32)                # car speed
    params = make_params(k_p, input_size, hidden_size)
    packed = pack_params(params)          # one-time packing into 2 slabs

    out = lstm_seq2seq_with_speed_forward(x, speed, packed, target_len)
    out = jax.block_until_ready(out)

    ref = jax.block_until_ready(reference_forward(x, speed, params, target_len))
    # Tolerance covers default MXU matmul precision (operands may be rounded to
    # bf16 internally) across the 16-step serial recurrence vs. the f32 reference.
    np.testing.assert_allclose(np.asarray(out), np.asarray(ref), rtol=2e-2, atol=1e-2)

    print("KERNEL_OK")
</pallas_src>

<mosaic_0001>
module attributes {stable_mosaic.version = 11 : i64} {
  func.func @seq2seq_kernel(%arg0: memref<8x2x1xf32, #tpu.memory_space<vmem>>, %arg1: memref<2x1xf32, #tpu.memory_space<vmem>>, %arg2: memref<40x128xf32, #tpu.memory_space<vmem>>, %arg3: memref<136x256xf32, #tpu.memory_space<vmem>>, %arg4: memref<8x2x1xf32, #tpu.memory_space<vmem>>) attributes {dimension_semantics = [], scalar_prefetch = 0 : i64, scratch_operands = 0 : i64, tpu.core_type = #tpu.core_type<tc>} {
    %c0 = arith.constant 0 : index
    %c0_0 = arith.constant 0 : index
    %c0_1 = arith.constant 0 : index
    %0 = vector.load %arg0[%c0, %c0_0, %c0_1] : memref<8x2x1xf32, #tpu.memory_space<vmem>>, vector<8x2x1xf32>
    %c0_2 = arith.constant 0 : index
    %c0_3 = arith.constant 0 : index
    %1 = vector.load %arg2[%c0_2, %c0_3] : memref<40x128xf32, #tpu.memory_space<vmem>>, vector<1x128xf32>
    %2 = vector.shape_cast %1 : vector<1x128xf32> to vector<1x1x128xf32>
    %3 = vector.broadcast %0 : vector<8x2x1xf32> to vector<8x2x128xf32>
    %4 = vector.broadcast %2 : vector<1x1x128xf32> to vector<8x2x128xf32>
    %5 = arith.mulf %3, %4 : vector<8x2x128xf32>
    %c1 = arith.constant 1 : index
    %c0_4 = arith.constant 0 : index
    %6 = vector.load %arg2[%c1, %c0_4] : memref<40x128xf32, #tpu.memory_space<vmem>>, vector<1x128xf32>
    %7 = vector.shape_cast %6 : vector<1x128xf32> to vector<1x1x128xf32>
    %8 = vector.broadcast %7 : vector<1x1x128xf32> to vector<8x2x128xf32>
    %9 = arith.addf %5, %8 : vector<8x2x128xf32>
    %c8 = arith.constant 8 : index
    %c0_5 = arith.constant 0 : index
    %10 = vector.load %arg2[%c8, %c0_5] : memref<40x128xf32, #tpu.memory_space<vmem>>, vector<32x128xf32>
    %cst = arith.constant 0.000000e+00 : f32
    %11 = vector.broadcast %cst : f32 to vector<2x32xf32>
    %cst_6 = arith.constant 0.000000e+00 : f32
    %12 = vector.broadcast %cst_6 : f32 to vector<2x32xf32>
    %13 = vector.extract_strided_slice %9 {offsets = [0, 0, 0], sizes = [1, 2, 128], strides = [1, 1, 1]} : vector<8x2x128xf32> to vector<1x2x128xf32>
    %14 = vector.shape_cast %13 : vector<1x2x128xf32> to vector<2x128xf32>
    %cst_7 = arith.constant dense<0.000000e+00> : vector<2x128xf32>
    %15 = tpu.matmul %11, %10, %cst_7 {dimension_numbers = #tpu.dot_dimension_numbers<[1], [0], [0], [1], [0, 0, 1, 1], [], []>} : vector<2x32xf32>, vector<32x128xf32>, vector<2x128xf32> -> vector<2x128xf32>
    %16 = arith.addf %14, %15 : vector<2x128xf32>
    %cst_8 = arith.constant 5.000000e-01 : f32
    %17 = vector.broadcast %cst_8 : f32 to vector<2x128xf32>
    %18 = arith.mulf %17, %16 : vector<2x128xf32>
    %19 = math.tanh %18 : vector<2x128xf32>
    %cst_9 = arith.constant 5.000000e-01 : f32
    %20 = vector.broadcast %cst_9 : f32 to vector<2x128xf32>
    %21 = arith.mulf %20, %19 : vector<2x128xf32>
    %cst_10 = arith.constant 5.000000e-01 : f32
    %22 = vector.broadcast %cst_10 : f32 to vector<2x128xf32>
    %23 = arith.addf %21, %22 : vector<2x128xf32>
    %24 = math.tanh %16 : vector<2x128xf32>
    %25 = vector.extract_strided_slice %23 {offsets = [0, 0], sizes = [2, 32], strides = [1, 1]} : vector<2x128xf32> to vector<2x32xf32>
    %26 = vector.extract_strided_slice %23 {offsets = [0, 32], sizes = [2, 32], strides = [1, 1]} : vector<2x128xf32> to vector<2x32xf32>
    %27 = vector.extract_strided_slice %24 {offsets = [0, 64], sizes = [2, 32], strides = [1, 1]} : vector<2x128xf32> to vector<2x32xf32>
    %28 = vector.extract_strided_slice %23 {offsets = [0, 96], sizes = [2, 32], strides = [1, 1]} : vector<2x128xf32> to vector<2x32xf32>
    %29 = arith.mulf %26, %12 : vector<2x32xf32>
    %30 = arith.mulf %25, %27 : vector<2x32xf32>
    %31 = arith.addf %29, %30 : vector<2x32xf32>
    %32 = math.tanh %31 : vector<2x32xf32>
    %33 = arith.mulf %28, %32 : vector<2x32xf32>
    %34 = vector.extract_strided_slice %9 {offsets = [1, 0, 0], sizes = [1, 2, 128], strides = [1, 1, 1]} : vector<8x2x128xf32> to vector<1x2x128xf32>
    %35 = vector.shape_cast %34 : vector<1x2x128xf32> to vector<2x128xf32>
    %cst_11 = arith.constant dense<0.000000e+00> : vector<2x128xf32>
    %36 = tpu.matmul %33, %10, %cst_11 {dimension_numbers = #tpu.dot_dimension_numbers<[1], [0], [0], [1], [0, 0, 1, 1], [], []>} : vector<2x32xf32>, vector<32x128xf32>, vector<2x128xf32> -> vector<2x128xf32>
    %37 = arith.addf %35, %36 : vector<2x128xf32>
    %cst_12 = arith.constant 5.000000e-01 : f32
    %38 = vector.broadcast %cst_12 : f32 to vector<2x128xf32>
    %39 = arith.mulf %38, %37 : vector<2x128xf32>
    %40 = math.tanh %39 : vector<2x128xf32>
    %cst_13 = arith.constant 5.000000e-01 : f32
    %41 = vector.broadcast %cst_13 : f32 to vector<2x128xf32>
    %42 = arith.mulf %41, %40 : vector<2x128xf32>
    %cst_14 = arith.constant 5.000000e-01 : f32
    %43 = vector.broadcast %cst_14 : f32 to vector<2x128xf32>
    %44 = arith.addf %42, %43 : vector<2x128xf32>
    %45 = math.tanh %37 : vector<2x128xf32>
    %46 = vector.extract_strided_slice %44 {offsets = [0, 0], sizes = [2, 32], strides = [1, 1]} : vector<2x128xf32> to vector<2x32xf32>
    %47 = vector.extract_strided_slice %44 {offsets = [0, 32], sizes = [2, 32], strides = [1, 1]} : vector<2x128xf32> to vector<2x32xf32>
    %48 = vector.extract_strided_slice %45 {offsets = [0, 64], sizes = [2, 32], strides = [1, 1]} : vector<2x128xf32> to vector<2x32xf32>
    %49 = vector.extract_strided_slice %44 {offsets = [0, 96], sizes = [2, 32], strides = [1, 1]} : vector<2x128xf32> to vector<2x32xf32>
    %50 = arith.mulf %47, %31 : vector<2x32xf32>
    %51 = arith.mulf %46, %48 : vector<2x32xf32>
    %52 = arith.addf %50, %51 : vector<2x32xf32>
    %53 = math.tanh %52 : vector<2x32xf32>
    %54 = arith.mulf %49, %53 : vector<2x32xf32>
    %55 = vector.extract_strided_slice %9 {offsets = [2, 0, 0], sizes = [1, 2, 128], strides = [1, 1, 1]} : vector<8x2x128xf32> to vector<1x2x128xf32>
    %56 = vector.shape_cast %55 : vector<1x2x128xf32> to vector<2x128xf32>
    %cst_15 = arith.constant dense<0.000000e+00> : vector<2x128xf32>
    %57 = tpu.matmul %54, %10, %cst_15 {dimension_numbers = #tpu.dot_dimension_numbers<[1], [0], [0], [1], [0, 0, 1, 1], [], []>} : vector<2x32xf32>, vector<32x128xf32>, vector<2x128xf32> -> vector<2x128xf32>
    %58 = arith.addf %56, %57 : vector<2x128xf32>
    %cst_16 = arith.constant 5.000000e-01 : f32
    %59 = vector.broadcast %cst_16 : f32 to vector<2x128xf32>
    %60 = arith.mulf %59, %58 : vector<2x128xf32>
    %61 = math.tanh %60 : vector<2x128xf32>
    %cst_17 = arith.constant 5.000000e-01 : f32
    %62 = vector.broadcast %cst_17 : f32 to vector<2x128xf32>
    %63 = arith.mulf %62, %61 : vector<2x128xf32>
    %cst_18 = arith.constant 5.000000e-01 : f32
    %64 = vector.broadcast %cst_18 : f32 to vector<2x128xf32>
    %65 = arith.addf %63, %64 : vector<2x128xf32>
    %66 = math.tanh %58 : vector<2x128xf32>
    %67 = vector.extract_strided_slice %65 {offsets = [0, 0], sizes = [2, 32], strides = [1, 1]} : vector<2x128xf32> to vector<2x32xf32>
    %68 = vector.extract_strided_slice %65 {offsets = [0, 32], sizes = [2, 32], strides = [1, 1]} : vector<2x128xf32> to vector<2x32xf32>
    %69 = vector.extract_strided_slice %66 {offsets = [0, 64], sizes = [2, 32], strides = [1, 1]} : vector<2x128xf32> to vector<2x32xf32>
    %70 = vector.extract_strided_slice %65 {offsets = [0, 96], sizes = [2, 32], strides = [1, 1]} : vector<2x128xf32> to vector<2x32xf32>
    %71 = arith.mulf %68, %52 : vector<2x32xf32>
    %72 = arith.mulf %67, %69 : vector<2x32xf32>
    %73 = arith.addf %71, %72 : vector<2x32xf32>
    %74 = math.tanh %73 : vector<2x32xf32>
    %75 = arith.mulf %70, %74 : vector<2x32xf32>
    %76 = vector.extract_strided_slice %9 {offsets = [3, 0, 0], sizes = [1, 2, 128], strides = [1, 1, 1]} : vector<8x2x128xf32> to vector<1x2x128xf32>
    %77 = vector.shape_cast %76 : vector<1x2x128xf32> to vector<2x128xf32>
    %cst_19 = arith.constant dense<0.000000e+00> : vector<2x128xf32>
    %78 = tpu.matmul %75, %10, %cst_19 {dimension_numbers = #tpu.dot_dimension_numbers<[1], [0], [0], [1], [0, 0, 1, 1], [], []>} : vector<2x32xf32>, vector<32x128xf32>, vector<2x128xf32> -> vector<2x128xf32>
    %79 = arith.addf %77, %78 : vector<2x128xf32>
    %cst_20 = arith.constant 5.000000e-01 : f32
    %80 = vector.broadcast %cst_20 : f32 to vector<2x128xf32>
    %81 = arith.mulf %80, %79 : vector<2x128xf32>
    %82 = math.tanh %81 : vector<2x128xf32>
    %cst_21 = arith.constant 5.000000e-01 : f32
    %83 = vector.broadcast %cst_21 : f32 to vector<2x128xf32>
    %84 = arith.mulf %83, %82 : vector<2x128xf32>
    %cst_22 = arith.constant 5.000000e-01 : f32
    %85 = vector.broadcast %cst_22 : f32 to vector<2x128xf32>
    %86 = arith.addf %84, %85 : vector<2x128xf32>
    %87 = math.tanh %79 : vector<2x128xf32>
    %88 = vector.extract_strided_slice %86 {offsets = [0, 0], sizes = [2, 32], strides = [1, 1]} : vector<2x128xf32> to vector<2x32xf32>
    %89 = vector.extract_strided_slice %86 {offsets = [0, 32], sizes = [2, 32], strides = [1, 1]} : vector<2x128xf32> to vector<2x32xf32>
    %90 = vector.extract_strided_slice %87 {offsets = [0, 64], sizes = [2, 32], strides = [1, 1]} : vector<2x128xf32> to vector<2x32xf32>
    %91 = vector.extract_strided_slice %86 {offsets = [0, 96], sizes = [2, 32], strides = [1, 1]} : vector<2x128xf32> to vector<2x32xf32>
    %92 = arith.mulf %89, %73 : vector<2x32xf32>
    %93 = arith.mulf %88, %90 : vector<2x32xf32>
    %94 = arith.addf %92, %93 : vector<2x32xf32>
    %95 = math.tanh %94 : vector<2x32xf32>
    %96 = arith.mulf %91, %95 : vector<2x32xf32>
    %97 = vector.extract_strided_slice %9 {offsets = [4, 0, 0], sizes = [1, 2, 128], strides = [1, 1, 1]} : vector<8x2x128xf32> to vector<1x2x128xf32>
    %98 = vector.shape_cast %97 : vector<1x2x128xf32> to vector<2x128xf32>
    %cst_23 = arith.constant dense<0.000000e+00> : vector<2x128xf32>
    %99 = tpu.matmul %96, %10, %cst_23 {dimension_numbers = #tpu.dot_dimension_numbers<[1], [0], [0], [1], [0, 0, 1, 1], [], []>} : vector<2x32xf32>, vector<32x128xf32>, vector<2x128xf32> -> vector<2x128xf32>
    %100 = arith.addf %98, %99 : vector<2x128xf32>
    %cst_24 = arith.constant 5.000000e-01 : f32
    %101 = vector.broadcast %cst_24 : f32 to vector<2x128xf32>
    %102 = arith.mulf %101, %100 : vector<2x128xf32>
    %103 = math.tanh %102 : vector<2x128xf32>
    %cst_25 = arith.constant 5.000000e-01 : f32
    %104 = vector.broadcast %cst_25 : f32 to vector<2x128xf32>
    %105 = arith.mulf %104, %103 : vector<2x128xf32>
    %cst_26 = arith.constant 5.000000e-01 : f32
    %106 = vector.broadcast %cst_26 : f32 to vector<2x128xf32>
    %107 = arith.addf %105, %106 : vector<2x128xf32>
    %108 = math.tanh %100 : vector<2x128xf32>
    %109 = vector.extract_strided_slice %107 {offsets = [0, 0], sizes = [2, 32], strides = [1, 1]} : vector<2x128xf32> to vector<2x32xf32>
    %110 = vector.extract_strided_slice %107 {offsets = [0, 32], sizes = [2, 32], strides = [1, 1]} : vector<2x128xf32> to vector<2x32xf32>
    %111 = vector.extract_strided_slice %108 {offsets = [0, 64], sizes = [2, 32], strides = [1, 1]} : vector<2x128xf32> to vector<2x32xf32>
    %112 = vector.extract_strided_slice %107 {offsets = [0, 96], sizes = [2, 32], strides = [1, 1]} : vector<2x128xf32> to vector<2x32xf32>
    %113 = arith.mulf %110, %94 : vector<2x32xf32>
    %114 = arith.mulf %109, %111 : vector<2x32xf32>
    %115 = arith.addf %113, %114 : vector<2x32xf32>
    %116 = math.tanh %115 : vector<2x32xf32>
    %117 = arith.mulf %112, %116 : vector<2x32xf32>
    %118 = vector.extract_strided_slice %9 {offsets = [5, 0, 0], sizes = [1, 2, 128], strides = [1, 1, 1]} : vector<8x2x128xf32> to vector<1x2x128xf32>
    %119 = vector.shape_cast %118 : vector<1x2x128xf32> to vector<2x128xf32>
    %cst_27 = arith.constant dense<0.000000e+00> : vector<2x128xf32>
    %120 = tpu.matmul %117, %10, %cst_27 {dimension_numbers = #tpu.dot_dimension_numbers<[1], [0], [0], [1], [0, 0, 1, 1], [], []>} : vector<2x32xf32>, vector<32x128xf32>, vector<2x128xf32> -> vector<2x128xf32>
    %121 = arith.addf %119, %120 : vector<2x128xf32>
    %cst_28 = arith.constant 5.000000e-01 : f32
    %122 = vector.broadcast %cst_28 : f32 to vector<2x128xf32>
    %123 = arith.mulf %122, %121 : vector<2x128xf32>
    %124 = math.tanh %123 : vector<2x128xf32>
    %cst_29 = arith.constant 5.000000e-01 : f32
    %125 = vector.broadcast %cst_29 : f32 to vector<2x128xf32>
    %126 = arith.mulf %125, %124 : vector<2x128xf32>
    %cst_30 = arith.constant 5.000000e-01 : f32
    %127 = vector.broadcast %cst_30 : f32 to vector<2x128xf32>
    %128 = arith.addf %126, %127 : vector<2x128xf32>
    %129 = math.tanh %121 : vector<2x128xf32>
    %130 = vector.extract_strided_slice %128 {offsets = [0, 0], sizes = [2, 32], strides = [1, 1]} : vector<2x128xf32> to vector<2x32xf32>
    %131 = vector.extract_strided_slice %128 {offsets = [0, 32], sizes = [2, 32], strides = [1, 1]} : vector<2x128xf32> to vector<2x32xf32>
    %132 = vector.extract_strided_slice %129 {offsets = [0, 64], sizes = [2, 32], strides = [1, 1]} : vector<2x128xf32> to vector<2x32xf32>
    %133 = vector.extract_strided_slice %128 {offsets = [0, 96], sizes = [2, 32], strides = [1, 1]} : vector<2x128xf32> to vector<2x32xf32>
    %134 = arith.mulf %131, %115 : vector<2x32xf32>
    %135 = arith.mulf %130, %132 : vector<2x32xf32>
    %136 = arith.addf %134, %135 : vector<2x32xf32>
    %137 = math.tanh %136 : vector<2x32xf32>
    %138 = arith.mulf %133, %137 : vector<2x32xf32>
    %139 = vector.extract_strided_slice %9 {offsets = [6, 0, 0], sizes = [1, 2, 128], strides = [1, 1, 1]} : vector<8x2x128xf32> to vector<1x2x128xf32>
    %140 = vector.shape_cast %139 : vector<1x2x128xf32> to vector<2x128xf32>
    %cst_31 = arith.constant dense<0.000000e+00> : vector<2x128xf32>
    %141 = tpu.matmul %138, %10, %cst_31 {dimension_numbers = #tpu.dot_dimension_numbers<[1], [0], [0], [1], [0, 0, 1, 1], [], []>} : vector<2x32xf32>, vector<32x128xf32>, vector<2x128xf32> -> vector<2x128xf32>
    %142 = arith.addf %140, %141 : vector<2x128xf32>
    %cst_32 = arith.constant 5.000000e-01 : f32
    %143 = vector.broadcast %cst_32 : f32 to vector<2x128xf32>
    %144 = arith.mulf %143, %142 : vector<2x128xf32>
    %145 = math.tanh %144 : vector<2x128xf32>
    %cst_33 = arith.constant 5.000000e-01 : f32
    %146 = vector.broadcast %cst_33 : f32 to vector<2x128xf32>
    %147 = arith.mulf %146, %145 : vector<2x128xf32>
    %cst_34 = arith.constant 5.000000e-01 : f32
    %148 = vector.broadcast %cst_34 : f32 to vector<2x128xf32>
    %149 = arith.addf %147, %148 : vector<2x128xf32>
    %150 = math.tanh %142 : vector<2x128xf32>
    %151 = vector.extract_strided_slice %149 {offsets = [0, 0], sizes = [2, 32], strides = [1, 1]} : vector<2x128xf32> to vector<2x32xf32>
    %152 = vector.extract_strided_slice %149 {offsets = [0, 32], sizes = [2, 32], strides = [1, 1]} : vector<2x128xf32> to vector<2x32xf32>
    %153 = vector.extract_strided_slice %150 {offsets = [0, 64], sizes = [2, 32], strides = [1, 1]} : vector<2x128xf32> to vector<2x32xf32>
    %154 = vector.extract_strided_slice %149 {offsets = [0, 96], sizes = [2, 32], strides = [1, 1]} : vector<2x128xf32> to vector<2x32xf32>
    %155 = arith.mulf %152, %136 : vector<2x32xf32>
    %156 = arith.mulf %151, %153 : vector<2x32xf32>
    %157 = arith.addf %155, %156 : vector<2x32xf32>
    %158 = math.tanh %157 : vector<2x32xf32>
    %159 = arith.mulf %154, %158 : vector<2x32xf32>
    %160 = vector.extract_strided_slice %9 {offsets = [7, 0, 0], sizes = [1, 2, 128], strides = [1, 1, 1]} : vector<8x2x128xf32> to vector<1x2x128xf32>
    %161 = vector.shape_cast %160 : vector<1x2x128xf32> to vector<2x128xf32>
    %cst_35 = arith.constant dense<0.000000e+00> : vector<2x128xf32>
    %162 = tpu.matmul %159, %10, %cst_35 {dimension_numbers = #tpu.dot_dimension_numbers<[1], [0], [0], [1], [0, 0, 1, 1], [], []>} : vector<2x32xf32>, vector<32x128xf32>, vector<2x128xf32> -> vector<2x128xf32>
    %163 = arith.addf %161, %162 : vector<2x128xf32>
    %cst_36 = arith.constant 5.000000e-01 : f32
    %164 = vector.broadcast %cst_36 : f32 to vector<2x128xf32>
    %165 = arith.mulf %164, %163 : vector<2x128xf32>
    %166 = math.tanh %165 : vector<2x128xf32>
    %cst_37 = arith.constant 5.000000e-01 : f32
    %167 = vector.broadcast %cst_37 : f32 to vector<2x128xf32>
    %168 = arith.mulf %167, %166 : vector<2x128xf32>
    %cst_38 = arith.constant 5.000000e-01 : f32
    %169 = vector.broadcast %cst_38 : f32 to vector<2x128xf32>
    %170 = arith.addf %168, %169 : vector<2x128xf32>
    %171 = math.tanh %163 : vector<2x128xf32>
    %172 = vector.extract_strided_slice %170 {offsets = [0, 0], sizes = [2, 32], strides = [1, 1]} : vector<2x128xf32> to vector<2x32xf32>
    %173 = vector.extract_strided_slice %170 {offsets = [0, 32], sizes = [2, 32], strides = [1, 1]} : vector<2x128xf32> to vector<2x32xf32>
    %174 = vector.extract_strided_slice %171 {offsets = [0, 64], sizes = [2, 32], strides = [1, 1]} : vector<2x128xf32> to vector<2x32xf32>
    %175 = vector.extract_strided_slice %170 {offsets = [0, 96], sizes = [2, 32], strides = [1, 1]} : vector<2x128xf32> to vector<2x32xf32>
    %176 = arith.mulf %173, %157 : vector<2x32xf32>
    %177 = arith.mulf %172, %174 : vector<2x32xf32>
    %178 = arith.addf %176, %177 : vector<2x32xf32>
    %179 = math.tanh %178 : vector<2x32xf32>
    %180 = arith.mulf %175, %179 : vector<2x32xf32>
    %c3 = arith.constant 3 : index
    %c0_39 = arith.constant 0 : index
    %181 = vector.load %arg3[%c3, %c0_39] : memref<136x256xf32, #tpu.memory_space<vmem>>, vector<1x1xf32>
    %c3_40 = arith.constant 3 : index
    %c1_41 = arith.constant 1 : index
    %182 = vector.load %arg3[%c3_40, %c1_41] : memref<136x256xf32, #tpu.memory_space<vmem>>, vector<1x1xf32>
    %c3_42 = arith.constant 3 : index
    %c2 = arith.constant 2 : index
    %183 = vector.load %arg3[%c3_42, %c2] : memref<136x256xf32, #tpu.memory_space<vmem>>, vector<1x1xf32>
    %c0_43 = arith.constant 0 : index
    %c0_44 = arith.constant 0 : index
    %184 = vector.load %arg1[%c0_43, %c0_44] : memref<2x1xf32, #tpu.memory_space<vmem>>, vector<2x1xf32>
    %185 = vector.broadcast %181 : vector<1x1xf32> to vector<2x1xf32>
    %186 = arith.mulf %184, %185 : vector<2x1xf32>
    %187 = vector.broadcast %182 : vector<1x1xf32> to vector<2x1xf32>
    %188 = arith.addf %186, %187 : vector<2x1xf32>
    %cst_45 = arith.constant 0.000000e+00 : f32
    %189 = vector.broadcast %cst_45 : f32 to vector<2x31xf32>
    %190 = tpu.concatenate %180, %188, %189 in 1 : vector<2x32xf32>, vector<2x1xf32>, vector<2x31xf32> -> vector<2x64xf32>
    %cst_46 = arith.constant 0.000000e+00 : f32
    %191 = vector.broadcast %cst_46 : f32 to vector<2x31xf32>
    %192 = tpu.concatenate %178, %188, %191 in 1 : vector<2x32xf32>, vector<2x1xf32>, vector<2x31xf32> -> vector<2x64xf32>
    %c0_47 = arith.constant 0 : index
    %c0_48 = arith.constant 0 : index
    %193 = vector.load %arg3[%c0_47, %c0_48] : memref<136x256xf32, #tpu.memory_space<vmem>>, vector<1x256xf32>
    %194 = vector.shape_cast %193 : vector<1x256xf32> to vector<1x256xf32>
    %195 = vector.broadcast %194 : vector<1x256xf32> to vector<2x256xf32>
    %c1_49 = arith.constant 1 : index
    %c0_50 = arith.constant 0 : index
    %196 = vector.load %arg3[%c1_49, %c0_50] : memref<136x256xf32, #tpu.memory_space<vmem>>, vector<1x256xf32>
    %197 = vector.shape_cast %196 : vector<1x256xf32> to vector<1x256xf32>
    %198 = vector.broadcast %197 : vector<1x256xf32> to vector<2x256xf32>
    %c2_51 = arith.constant 2 : index
    %c0_52 = arith.constant 0 : index
    %199 = vector.load %arg3[%c2_51, %c0_52] : memref<136x256xf32, #tpu.memory_space<vmem>>, vector<1x64xf32>
    %c8_53 = arith.constant 8 : index
    %c0_54 = arith.constant 0 : index
    %200 = vector.load %arg3[%c8_53, %c0_54] : memref<136x256xf32, #tpu.memory_space<vmem>>, vector<64x256xf32>
    %c72 = arith.constant 72 : index
    %c0_55 = arith.constant 0 : index
    %201 = vector.load %arg3[%c72, %c0_55] : memref<136x256xf32, #tpu.memory_space<vmem>>, vector<64x256xf32>
    %cst_56 = arith.constant dense<0.000000e+00> : vector<2x256xf32>
    %202 = tpu.matmul %190, %200, %cst_56 {dimension_numbers = #tpu.dot_dimension_numbers<[1], [0], [0], [1], [0, 0, 1, 1], [], []>} : vector<2x64xf32>, vector<64x256xf32>, vector<2x256xf32> -> vector<2x256xf32>
    %203 = arith.addf %195, %202 : vector<2x256xf32>
    %cst_57 = arith.constant 5.000000e-01 : f32
    %204 = vector.broadcast %cst_57 : f32 to vector<2x256xf32>
    %205 = arith.mulf %204, %203 : vector<2x256xf32>
    %206 = math.tanh %205 : vector<2x256xf32>
    %cst_58 = arith.constant 5.000000e-01 : f32
    %207 = vector.broadcast %cst_58 : f32 to vector<2x256xf32>
    %208 = arith.mulf %207, %206 : vector<2x256xf32>
    %cst_59 = arith.constant 5.000000e-01 : f32
    %209 = vector.broadcast %cst_59 : f32 to vector<2x256xf32>
    %210 = arith.addf %208, %209 : vector<2x256xf32>
    %211 = math.tanh %203 : vector<2x256xf32>
    %212 = vector.extract_strided_slice %210 {offsets = [0, 0], sizes = [2, 64], strides = [1, 1]} : vector<2x256xf32> to vector<2x64xf32>
    %213 = vector.extract_strided_slice %210 {offsets = [0, 64], sizes = [2, 64], strides = [1, 1]} : vector<2x256xf32> to vector<2x64xf32>
    %214 = vector.extract_strided_slice %211 {offsets = [0, 128], sizes = [2, 64], strides = [1, 1]} : vector<2x256xf32> to vector<2x64xf32>
    %215 = vector.extract_strided_slice %210 {offsets = [0, 192], sizes = [2, 64], strides = [1, 1]} : vector<2x256xf32> to vector<2x64xf32>
    %216 = arith.mulf %213, %192 : vector<2x64xf32>
    %217 = arith.mulf %212, %214 : vector<2x64xf32>
    %218 = arith.addf %216, %217 : vector<2x64xf32>
    %219 = math.tanh %218 : vector<2x64xf32>
    %220 = arith.mulf %215, %219 : vector<2x64xf32>
    %cst_60 = arith.constant dense<0.000000e+00> : vector<2x256xf32>
    %221 = tpu.matmul %220, %201, %cst_60 {dimension_numbers = #tpu.dot_dimension_numbers<[1], [0], [0], [1], [0, 0, 1, 1], [], []>} : vector<2x64xf32>, vector<64x256xf32>, vector<2x256xf32> -> vector<2x256xf32>
    %222 = arith.addf %198, %221 : vector<2x256xf32>
    %cst_61 = arith.constant 5.000000e-01 : f32
    %223 = vector.broadcast %cst_61 : f32 to vector<2x256xf32>
    %224 = arith.mulf %223, %222 : vector<2x256xf32>
    %225 = math.tanh %224 : vector<2x256xf32>
    %cst_62 = arith.constant 5.000000e-01 : f32
    %226 = vector.broadcast %cst_62 : f32 to vector<2x256xf32>
    %227 = arith.mulf %226, %225 : vector<2x256xf32>
    %cst_63 = arith.constant 5.000000e-01 : f32
    %228 = vector.broadcast %cst_63 : f32 to vector<2x256xf32>
    %229 = arith.addf %227, %228 : vector<2x256xf32>
    %230 = math.tanh %222 : vector<2x256xf32>
    %231 = vector.extract_strided_slice %229 {offsets = [0, 0], sizes = [2, 64], strides = [1, 1]} : vector<2x256xf32> to vector<2x64xf32>
    %232 = vector.extract_strided_slice %229 {offsets = [0, 64], sizes = [2, 64], strides = [1, 1]} : vector<2x256xf32> to vector<2x64xf32>
    %233 = vector.extract_strided_slice %230 {offsets = [0, 128], sizes = [2, 64], strides = [1, 1]} : vector<2x256xf32> to vector<2x64xf32>
    %234 = vector.extract_strided_slice %229 {offsets = [0, 192], sizes = [2, 64], strides = [1, 1]} : vector<2x256xf32> to vector<2x64xf32>
    %235 = arith.mulf %232, %218 : vector<2x64xf32>
    %236 = arith.mulf %231, %233 : vector<2x64xf32>
    %237 = arith.addf %235, %236 : vector<2x64xf32>
    %238 = math.tanh %237 : vector<2x64xf32>
    %239 = arith.mulf %234, %238 : vector<2x64xf32>
    %cst_64 = arith.constant dense<0.000000e+00> : vector<2x256xf32>
    %240 = tpu.matmul %239, %201, %cst_64 {dimension_numbers = #tpu.dot_dimension_numbers<[1], [0], [0], [1], [0, 0, 1, 1], [], []>} : vector<2x64xf32>, vector<64x256xf32>, vector<2x256xf32> -> vector<2x256xf32>
    %241 = arith.addf %198, %240 : vector<2x256xf32>
    %cst_65 = arith.constant 5.000000e-01 : f32
    %242 = vector.broadcast %cst_65 : f32 to vector<2x256xf32>
    %243 = arith.mulf %242, %241 : vector<2x256xf32>
    %244 = math.tanh %243 : vector<2x256xf32>
    %cst_66 = arith.constant 5.000000e-01 : f32
    %245 = vector.broadcast %cst_66 : f32 to vector<2x256xf32>
    %246 = arith.mulf %245, %244 : vector<2x256xf32>
    %cst_67 = arith.constant 5.000000e-01 : f32
    %247 = vector.broadcast %cst_67 : f32 to vector<2x256xf32>
    %248 = arith.addf %246, %247 : vector<2x256xf32>
    %249 = math.tanh %241 : vector<2x256xf32>
    %250 = vector.extract_strided_slice %248 {offsets = [0, 0], sizes = [2, 64], strides = [1, 1]} : vector<2x256xf32> to vector<2x64xf32>
    %251 = vector.extract_strided_slice %248 {offsets = [0, 64], sizes = [2, 64], strides = [1, 1]} : vector<2x256xf32> to vector<2x64xf32>
    %252 = vector.extract_strided_slice %249 {offsets = [0, 128], sizes = [2, 64], strides = [1, 1]} : vector<2x256xf32> to vector<2x64xf32>
    %253 = vector.extract_strided_slice %248 {offsets = [0, 192], sizes = [2, 64], strides = [1, 1]} : vector<2x256xf32> to vector<2x64xf32>
    %254 = arith.mulf %251, %237 : vector<2x64xf32>
    %255 = arith.mulf %250, %252 : vector<2x64xf32>
    %256 = arith.addf %254, %255 : vector<2x64xf32>
    %257 = math.tanh %256 : vector<2x64xf32>
    %258 = arith.mulf %253, %257 : vector<2x64xf32>
    %cst_68 = arith.constant dense<0.000000e+00> : vector<2x256xf32>
    %259 = tpu.matmul %258, %201, %cst_68 {dimension_numbers = #tpu.dot_dimension_numbers<[1], [0], [0], [1], [0, 0, 1, 1], [], []>} : vector<2x64xf32>, vector<64x256xf32>, vector<2x256xf32> -> vector<2x256xf32>
    %260 = arith.addf %198, %259 : vector<2x256xf32>
    %cst_69 = arith.constant 5.000000e-01 : f32
    %261 = vector.broadcast %cst_69 : f32 to vector<2x256xf32>
    %262 = arith.mulf %261, %260 : vector<2x256xf32>
    %263 = math.tanh %262 : vector<2x256xf32>
    %cst_70 = arith.constant 5.000000e-01 : f32
    %264 = vector.broadcast %cst_70 : f32 to vector<2x256xf32>
    %265 = arith.mulf %264, %263 : vector<2x256xf32>
    %cst_71 = arith.constant 5.000000e-01 : f32
    %266 = vector.broadcast %cst_71 : f32 to vector<2x256xf32>
    %267 = arith.addf %265, %266 : vector<2x256xf32>
    %268 = math.tanh %260 : vector<2x256xf32>
    %269 = vector.extract_strided_slice %267 {offsets = [0, 0], sizes = [2, 64], strides = [1, 1]} : vector<2x256xf32> to vector<2x64xf32>
    %270 = vector.extract_strided_slice %267 {offsets = [0, 64], sizes = [2, 64], strides = [1, 1]} : vector<2x256xf32> to vector<2x64xf32>
    %271 = vector.extract_strided_slice %268 {offsets = [0, 128], sizes = [2, 64], strides = [1, 1]} : vector<2x256xf32> to vector<2x64xf32>
    %272 = vector.extract_strided_slice %267 {offsets = [0, 192], sizes = [2, 64], strides = [1, 1]} : vector<2x256xf32> to vector<2x64xf32>
    %273 = arith.mulf %270, %256 : vector<2x64xf32>
    %274 = arith.mulf %269, %271 : vector<2x64xf32>
    %275 = arith.addf %273, %274 : vector<2x64xf32>
    %276 = math.tanh %275 : vector<2x64xf32>
    %277 = arith.mulf %272, %276 : vector<2x64xf32>
    %cst_72 = arith.constant dense<0.000000e+00> : vector<2x256xf32>
    %278 = tpu.matmul %277, %201, %cst_72 {dimension_numbers = #tpu.dot_dimension_numbers<[1], [0], [0], [1], [0, 0, 1, 1], [], []>} : vector<2x64xf32>, vector<64x256xf32>, vector<2x256xf32> -> vector<2x256xf32>
    %279 = arith.addf %198, %278 : vector<2x256xf32>
    %cst_73 = arith.constant 5.000000e-01 : f32
    %280 = vector.broadcast %cst_73 : f32 to vector<2x256xf32>
    %281 = arith.mulf %280, %279 : vector<2x256xf32>
    %282 = math.tanh %281 : vector<2x256xf32>
    %cst_74 = arith.constant 5.000000e-01 : f32
    %283 = vector.broadcast %cst_74 : f32 to vector<2x256xf32>
    %284 = arith.mulf %283, %282 : vector<2x256xf32>
    %cst_75 = arith.constant 5.000000e-01 : f32
    %285 = vector.broadcast %cst_75 : f32 to vector<2x256xf32>
    %286 = arith.addf %284, %285 : vector<2x256xf32>
    %287 = math.tanh %279 : vector<2x256xf32>
    %288 = vector.extract_strided_slice %286 {offsets = [0, 0], sizes = [2, 64], strides = [1, 1]} : vector<2x256xf32> to vector<2x64xf32>
    %289 = vector.extract_strided_slice %286 {offsets = [0, 64], sizes = [2, 64], strides = [1, 1]} : vector<2x256xf32> to vector<2x64xf32>
    %290 = vector.extract_strided_slice %287 {offsets = [0, 128], sizes = [2, 64], strides = [1, 1]} : vector<2x256xf32> to vector<2x64xf32>
    %291 = vector.extract_strided_slice %286 {offsets = [0, 192], sizes = [2, 64], strides = [1, 1]} : vector<2x256xf32> to vector<2x64xf32>
    %292 = arith.mulf %289, %275 : vector<2x64xf32>
    %293 = arith.mulf %288, %290 : vector<2x64xf32>
    %294 = arith.addf %292, %293 : vector<2x64xf32>
    %295 = math.tanh %294 : vector<2x64xf32>
    %296 = arith.mulf %291, %295 : vector<2x64xf32>
    %cst_76 = arith.constant dense<0.000000e+00> : vector<2x256xf32>
    %297 = tpu.matmul %296, %201, %cst_76 {dimension_numbers = #tpu.dot_dimension_numbers<[1], [0], [0], [1], [0, 0, 1, 1], [], []>} : vector<2x64xf32>, vector<64x256xf32>, vector<2x256xf32> -> vector<2x256xf32>
    %298 = arith.addf %198, %297 : vector<2x256xf32>
    %cst_77 = arith.constant 5.000000e-01 : f32
    %299 = vector.broadcast %cst_77 : f32 to vector<2x256xf32>
    %300 = arith.mulf %299, %298 : vector<2x256xf32>
    %301 = math.tanh %300 : vector<2x256xf32>
    %cst_78 = arith.constant 5.000000e-01 : f32
    %302 = vector.broadcast %cst_78 : f32 to vector<2x256xf32>
    %303 = arith.mulf %302, %301 : vector<2x256xf32>
    %cst_79 = arith.constant 5.000000e-01 : f32
    %304 = vector.broadcast %cst_79 : f32 to vector<2x256xf32>
    %305 = arith.addf %303, %304 : vector<2x256xf32>
    %306 = math.tanh %298 : vector<2x256xf32>
    %307 = vector.extract_strided_slice %305 {offsets = [0, 0], sizes = [2, 64], strides = [1, 1]} : vector<2x256xf32> to vector<2x64xf32>
    %308 = vector.extract_strided_slice %305 {offsets = [0, 64], sizes = [2, 64], strides = [1, 1]} : vector<2x256xf32> to vector<2x64xf32>
    %309 = vector.extract_strided_slice %306 {offsets = [0, 128], sizes = [2, 64], strides = [1, 1]} : vector<2x256xf32> to vector<2x64xf32>
    %310 = vector.extract_strided_slice %305 {offsets = [0, 192], sizes = [2, 64], strides = [1, 1]} : vector<2x256xf32> to vector<2x64xf32>
    %311 = arith.mulf %308, %294 : vector<2x64xf32>
    %312 = arith.mulf %307, %309 : vector<2x64xf32>
    %313 = arith.addf %311, %312 : vector<2x64xf32>
    %314 = math.tanh %313 : vector<2x64xf32>
    %315 = arith.mulf %310, %314 : vector<2x64xf32>
    %cst_80 = arith.constant dense<0.000000e+00> : vector<2x256xf32>
    %316 = tpu.matmul %315, %201, %cst_80 {dimension_numbers = #tpu.dot_dimension_numbers<[1], [0], [0], [1], [0, 0, 1, 1], [], []>} : vector<2x64xf32>, vector<64x256xf32>, vector<2x256xf32> -> vector<2x256xf32>
    %317 = arith.addf %198, %316 : vector<2x256xf32>
    %cst_81 = arith.constant 5.000000e-01 : f32
    %318 = vector.broadcast %cst_81 : f32 to vector<2x256xf32>
    %319 = arith.mulf %318, %317 : vector<2x256xf32>
    %320 = math.tanh %319 : vector<2x256xf32>
    %cst_82 = arith.constant 5.000000e-01 : f32
    %321 = vector.broadcast %cst_82 : f32 to vector<2x256xf32>
    %322 = arith.mulf %321, %320 : vector<2x256xf32>
    %cst_83 = arith.constant 5.000000e-01 : f32
    %323 = vector.broadcast %cst_83 : f32 to vector<2x256xf32>
    %324 = arith.addf %322, %323 : vector<2x256xf32>
    %325 = math.tanh %317 : vector<2x256xf32>
    %326 = vector.extract_strided_slice %324 {offsets = [0, 0], sizes = [2, 64], strides = [1, 1]} : vector<2x256xf32> to vector<2x64xf32>
    %327 = vector.extract_strided_slice %324 {offsets = [0, 64], sizes = [2, 64], strides = [1, 1]} : vector<2x256xf32> to vector<2x64xf32>
    %328 = vector.extract_strided_slice %325 {offsets = [0, 128], sizes = [2, 64], strides = [1, 1]} : vector<2x256xf32> to vector<2x64xf32>
    %329 = vector.extract_strided_slice %324 {offsets = [0, 192], sizes = [2, 64], strides = [1, 1]} : vector<2x256xf32> to vector<2x64xf32>
    %330 = arith.mulf %327, %313 : vector<2x64xf32>
    %331 = arith.mulf %326, %328 : vector<2x64xf32>
    %332 = arith.addf %330, %331 : vector<2x64xf32>
    %333 = math.tanh %332 : vector<2x64xf32>
    %334 = arith.mulf %329, %333 : vector<2x64xf32>
    %cst_84 = arith.constant dense<0.000000e+00> : vector<2x256xf32>
    %335 = tpu.matmul %334, %201, %cst_84 {dimension_numbers = #tpu.dot_dimension_numbers<[1], [0], [0], [1], [0, 0, 1, 1], [], []>} : vector<2x64xf32>, vector<64x256xf32>, vector<2x256xf32> -> vector<2x256xf32>
    %336 = arith.addf %198, %335 : vector<2x256xf32>
    %cst_85 = arith.constant 5.000000e-01 : f32
    %337 = vector.broadcast %cst_85 : f32 to vector<2x256xf32>
    %338 = arith.mulf %337, %336 : vector<2x256xf32>
    %339 = math.tanh %338 : vector<2x256xf32>
    %cst_86 = arith.constant 5.000000e-01 : f32
    %340 = vector.broadcast %cst_86 : f32 to vector<2x256xf32>
    %341 = arith.mulf %340, %339 : vector<2x256xf32>
    %cst_87 = arith.constant 5.000000e-01 : f32
    %342 = vector.broadcast %cst_87 : f32 to vector<2x256xf32>
    %343 = arith.addf %341, %342 : vector<2x256xf32>
    %344 = math.tanh %336 : vector<2x256xf32>
    %345 = vector.extract_strided_slice %343 {offsets = [0, 0], sizes = [2, 64], strides = [1, 1]} : vector<2x256xf32> to vector<2x64xf32>
    %346 = vector.extract_strided_slice %343 {offsets = [0, 64], sizes = [2, 64], strides = [1, 1]} : vector<2x256xf32> to vector<2x64xf32>
    %347 = vector.extract_strided_slice %344 {offsets = [0, 128], sizes = [2, 64], strides = [1, 1]} : vector<2x256xf32> to vector<2x64xf32>
    %348 = vector.extract_strided_slice %343 {offsets = [0, 192], sizes = [2, 64], strides = [1, 1]} : vector<2x256xf32> to vector<2x64xf32>
    %349 = arith.mulf %346, %332 : vector<2x64xf32>
    %350 = arith.mulf %345, %347 : vector<2x64xf32>
    %351 = arith.addf %349, %350 : vector<2x64xf32>
    %352 = math.tanh %351 : vector<2x64xf32>
    %353 = arith.mulf %348, %352 : vector<2x64xf32>
    %354 = vector.shape_cast %220 : vector<2x64xf32> to vector<1x2x64xf32>
    %355 = vector.shape_cast %239 : vector<2x64xf32> to vector<1x2x64xf32>
    %356 = vector.shape_cast %258 : vector<2x64xf32> to vector<1x2x64xf32>
    %357 = vector.shape_cast %277 : vector<2x64xf32> to vector<1x2x64xf32>
    %358 = vector.shape_cast %296 : vector<2x64xf32> to vector<1x2x64xf32>
    %359 = vector.shape_cast %315 : vector<2x64xf32> to vector<1x2x64xf32>
    %360 = vector.shape_cast %334 : vector<2x64xf32> to vector<1x2x64xf32>
    %361 = vector.shape_cast %353 : vector<2x64xf32> to vector<1x2x64xf32>
    %362 = tpu.concatenate %354, %355, %356, %357, %358, %359, %360, %361 in 0 : vector<1x2x64xf32>, vector<1x2x64xf32>, vector<1x2x64xf32>, vector<1x2x64xf32>, vector<1x2x64xf32>, vector<1x2x64xf32>, vector<1x2x64xf32>, vector<1x2x64xf32> -> vector<8x2x64xf32>
    %363 = vector.shape_cast %199 : vector<1x64xf32> to vector<1x1x64xf32>
    %364 = vector.broadcast %363 : vector<1x1x64xf32> to vector<8x2x64xf32>
    %365 = arith.mulf %362, %364 : vector<8x2x64xf32>
    %cst_88 = arith.constant dense<0.000000e+00> : vector<8x2xf32>
    %366 = vector.multi_reduction <add>, %365, %cst_88 [2] : vector<8x2x64xf32> to vector<8x2xf32>
    %367 = vector.shape_cast %366 : vector<8x2xf32> to vector<8x2x1xf32>
    %368 = vector.shape_cast %183 : vector<1x1xf32> to vector<1x1x1xf32>
    %369 = vector.broadcast %368 : vector<1x1x1xf32> to vector<8x2x1xf32>
    %370 = arith.addf %367, %369 : vector<8x2x1xf32>
    %c0_89 = arith.constant 0 : index
    %c0_90 = arith.constant 0 : index
    %c0_91 = arith.constant 0 : index
    %371 = vector.load %arg4[%c0_89, %c0_90, %c0_91] : memref<8x2x1xf32, #tpu.memory_space<vmem>>, vector<8x2x1xf32>
    tpu.vector_store %arg4[%c0_89, %c0_90, %c0_91], %370 {strides = array<i32>} : memref<8x2x1xf32, #tpu.memory_space<vmem>>, vector<8x2x1xf32>,
    return
  }
}

</mosaic_0001>

<bundles_post_ra>
// kernel: tpu_custom_call.1
= control target key start
LH: loop header
LB: loop body
LE: loop exit
PB: predicated region body
PF: predicated region fallthrough
CT: control target
= control target key end

     0   :  { %9 = vsyncpa [#allocation3], 0  ;;  %s2811_s0 = inlined_call_operand.vmem [shape: f32[8,2,1], index: 0, kind: input, shape index: {}]   ;;  %s2812_s1 = inlined_call_operand.vmem [shape: f32[2,1], index: 1, kind: input, shape index: {}]   ;;  %s2813_s2 = inlined_call_operand.hbm [shape: f32[40,128], index: 2, kind: input, shape index: {}]   ;;  %s2814_s3 = inlined_call_operand.hbm [shape: f32[136,256], index: 3, kind: input, shape index: {}]   ;;  %s2815_s4 = inlined_call_operand.vmem [shape: f32[8,2,1], index: 4, kind: output, shape index: {}]  }
   0x1   :  { %10 = vsyncpa [#allocation5], 0  ;;  %s2382_s15 = smov [#allocation2]   ;;  %s2334_s19 = scalar_lea.hbm %s2813_s2, 640 }
   0x2   :  { %s20_s16 = sshll.u32 %s2382_s15, 4  ;;  %p2335_p0 = scmp.ne.s32.totalorder %s2813_s2, %s2334_s19  ;;  %s21_s16 = int_to_ptr.vmem [resolvable:$true] %s20_s16 }
   0x3   :  { %p2338_p1 = scmp.lt.u32.totalorder %s2334_s19, %s2813_s2 }
   0x5   :  { %p2340_p2 = pnand %p2338_p1, %p2335_p0 }
   0x7   :  { %2343 = shalt.err (!%p2340_p2)
}
   0x8   :  { %s2344_s24 = scalar_lea.vmem %s21_s16, 640  ;;  %p2349_p4 = scmp.lt.s32.totalorder %s21_s16, %s21_s16 }
   0x9   :  { %p2345_p3 = scmp.ne.s32.totalorder %s21_s16, %s2344_s24  ;;  %p2350_p5 = scmp.lt.s32.totalorder %s2344_s24, %s2344_s24 }
   0xb   :  { %p2351_p6 = por %p2350_p5, %p2349_p4 }
   0xd   :  { %p2352_p7 = pnand %p2351_p6, %p2345_p3 }
   0xf   :  { %2355 = shalt.err (!%p2352_p7)
}
  0x10   :  { %s2383_s25 = smov 128   ;;  %s2384_s26 = smov 8  }
  0x11   :  { %26 = dma.hbm_to_vmem [thread:$0]  %s2813_s2, 640, %s21_s16, [#allocation3], %s2383_s25, %s2383_s25, %s2384_s26  }
  0x12   :  { %s2385_s29 = smov [#allocation4]   ;;  %s2356_s7 = scalar_lea.hbm %s2814_s3, 4352 }
  0x13   :  { %s32_s30 = sshll.u32 %s2385_s29, 4  ;;  %p2357_p8 = scmp.ne.s32.totalorder %s2814_s3, %s2356_s7  ;;  %s33_s30 = int_to_ptr.vmem [resolvable:$true] %s32_s30 }
  0x14   :  { %p2360_p9 = scmp.lt.u32.totalorder %s2356_s7, %s2814_s3 }
  0x16   :  { %p2362_p10 = pnand %p2360_p9, %p2357_p8 }
  0x18   :  { %2365 = shalt.err (!%p2362_p10)
}
  0x19   :  { %s2366_s12 = scalar_lea.vmem %s33_s30, 4352  ;;  %p2371_p12 = scmp.lt.s32.totalorder %s33_s30, %s33_s30 }
  0x1a   :  { %p2367_p11 = scmp.ne.s32.totalorder %s33_s30, %s2366_s12  ;;  %p2372_p13 = scmp.lt.s32.totalorder %s2366_s12, %s2366_s12 }
  0x1c   :  { %p2373_p0 = por %p2372_p13, %p2371_p12 }
  0x1e   :  { %p2374_p1 = pnand %p2373_p0, %p2367_p11 }
  0x20   :  { %2377 = shalt.err (!%p2374_p1)
}
  0x21   :  { %s2386_s2 = smov 256   ;;  %s2387_s13 = smov 16  }
  0x22   :  { %38 = dma.hbm_to_vmem [thread:$0]  %s2814_s3, 4352, %s33_s30, [#allocation5], %s2386_s2, %s2386_s2, %s2387_s13  }
  0x23   :  { %2378 = dma.done.wait [#allocation3], 640  }
  0x24   :  { %2379 = vsyncadd [#allocation3], 4294966656 }
  0x25   :  { %2380 = dma.done.wait [#allocation5], 4352  }
  0x26   :  { %2381 = vsyncadd [#allocation5], 4294962944  ;;  %v2388_v0 = vmov 0.0|0.0   ;;  %vm2389_vm0 = vmmov 0   ;;  %v2390_v1 = vmov 0.0   ;;  %v2391_v2 = vmov 0  }
  0x27   :  { %2029 = vmatprep.subr.bf16.mxu0 %v2388_v0  ;;  %1949 = vmatprep.mubr.msk.f32.mxu0 %vm2389_vm0, %v2390_v1  ;;  %v119_v3 = vld [vmem:[#allocation2 + $0x8] sm:$0xff]  ;;  %v120_v4 = vld [vmem:[#allocation2 + $0x10] sm:$0xff]  ;;  %v121_v5 = vld [vmem:[#allocation2 + $0x18] sm:$0xff]  ;;  %s2392_s17 = smov 64   ;;  %s2393_s18 = smov 32   ;;  %vm123_vm1 = vcmask 261120  }
  0x28   :  { %2220 = vset.pattern.permute.xlu0 %v2391_v2  ;;  %2035 = vmatprep.subr.bf16.mxu1 %v2388_v0  ;;  %v2452_v6 = vpack.c.bf16 %v120_v4, %v119_v3  ;;  %v122_v7 = vld [vmem:[#allocation2 + $0x20] sm:$0xff]  ;;  %vm923_vm2 = vcmask 269312   ;;  %vm989_vm3 = vcmask 523264   ;;  %vm1804_vm4 = vcmask 517120   ;;  %s2396_s9 = smov 126  }
  0x29   :  { %1960 = vmatprep.mubr.msk.f32.mxu1 %vm2389_vm0, %v2390_v1  ;;  %2221 = vset.pattern.permute.xlu1 %v2391_v2  ;;  %v45_v8 = vld [vmem:[%s2811_s0] sm:$0x3]  ;;  %v2458_v9 = vpack.c.bf16 %v122_v7, %v121_v5  ;;  %v46_v29 = vld [vmem:[%s2811_s0 + $0x2] sm:$0x3]  ;;  %v47_v50 = vld [vmem:[%s2811_s0 + $0x4] sm:$0x3] }
  0x2a   :  { %56 = vperm.xlu0 %2220, %v45_v8   ;;  %2031 = vmatpush3.bf16.msra.mxu0 %v2452_v6  ;;  %v2474_v10 = vld [vmem:[#allocation2] ss:$0 sm:$0xff]  ;;  %v2477_v13 = vld [vmem:[#allocation2 + $0x1] ss:$0 sm:$0xff]  ;;  %vm1869_vm5 = vcmask 1024  }
  0x2b   :  { %2037 = vmatpush3.bf16.msra.mxu1 %v2452_v6  ;;  %2032 = vmatprep.subr.bf16.mxu0 %v2388_v0 }
  0x2c   :  { %2038 = vmatprep.subr.bf16.mxu1 %v2388_v0 }
  0x2e   :  { %2034 = vmatpush3.bf16.msra.mxu0 %v2458_v9 }
  0x2f   :  { %2040 = vmatpush3.bf16.msra.mxu1 %v2458_v9  ;;  %2041 = vmatprep.subr.bf16.mxu0 %v2388_v0 }
  0x30   :  { %2047 = vmatprep.subr.bf16.mxu1 %v2388_v0 }
  0x31   :  { %1950 = vmatmul.mubr.f32.vlgmr.msra.gmra.mrb[0].mxu0 %v2390_v1 }
  0x32   :  { %2043 = vmatpush3.bf16.msra.mxu0 %v2452_v6  ;;  %1971 = vmatprep.mubr.msk.f32.mxu0 %vm2389_vm0, %v2390_v1 }
  0x33   :  { %2044 = vmatprep.subr.bf16.mxu0 %v2388_v0 }
  0x36   :  { %2046 = vmatpush3.bf16.msra.mxu0 %v2458_v9 }
  0x37   :  { %2053 = vmatprep.subr.bf16.mxu0 %v2388_v0 }
  0xa9   :  { %v57_v11 = vpop.permute.xlu0 %56 }
  0xaa   :  { %v98_v12 = vmul.f32 %v2474_v10, %v57_v11 }
  0xac   :  { %v111_v14 = vadd.f32 %v2477_v13, %v98_v12  ;;  %v48_v12 = vld [vmem:[%s2811_s0 + $0x6] sm:$0x3] }
 0x104   :  { %v193_v15 = vpop.f32.mrb[0].mxu0 }
 0x105   :  { %v197_v16 = vadd.f32 %v193_v15, %v111_v14  ;;  %v1951_v17 = vpop.f32.mrb[1].mxu0 }
 0x107   :  { %2222 = vtanh.f32 %v197_v16  ;;  %v198_v19 = vmul.f32 0.5, %v197_v16 }
 0x109   :  { %2224 = vtanh.f32 %v198_v19 }
 0x111   :  { %v2223_v18 = vpop.eup %2222 }
 0x112   :  { %205 = vrot.lane.b32.xlu0 %v2223_v18, %s2392_s17 }
 0x113   :  { %v2225_v20 = vpop.eup %2224 }
 0x114   :  { %v200_v21 = vmul.f32 0.5, %v2225_v20 }
 0x116   :  { %v201_v22 = vadd.f32 0.5, %v200_v21 }
 0x118   :  { %v203_v25 = vmul.f32 0.0, %v201_v22 }
 0x184   :  { %v206_v23 = vpop.permute.xlu0 %205 }
 0x185   :  { %v208_v24 = vmul.f32 %v206_v23, %v201_v22 }
 0x187   :  { %210 = vrot.lane.b32.xlu1 %v208_v24, %s2393_s18 }
 0x1f9   :  { %v211_v26 = vpop.permute.xlu1 %210 }
 0x1fa   :  { %v213_v27 = vadd.f32 %v211_v26, %v203_v25 }
 0x1fc   :  { %2226 = vtanh.f32 %v213_v27 }
 0x206   :  { %v2227_v28 = vpop.eup %2226 }
 0x207   :  { %216 = vrot.lane.b32.xlu1 %v2227_v28, %s2392_s17 }
 0x20b   :  { %61 = vperm.xlu1 %2221, %v46_v29  }
 0x279   :  { %v217_v30 = vpop.permute.xlu1 %216 }
 0x27a   :  { %v219_v31 = vmul.f32 %v217_v30, %v201_v22 }
 0x27c   :  { %221 = vrot.lane.b32.xlu0 %v219_v31, %s2393_s18 }
 0x28a   :  { %v62_v33 = vpop.permute.xlu1 %61 }
 0x28b   :  { %v99_v34 = vmul.f32 %v2474_v10, %v62_v33 }
 0x28d   :  { %v112_v35 = vadd.f32 %v2477_v13, %v99_v34  ;;  %v49_v34 = vld [vmem:[%s2811_s0 + $0x8] sm:$0x3] }
 0x2ee   :  { %v222_v32 = vpop.permute.xlu0 %221 }
 0x2ef   :  { %1961 = vmatmul.mubr.msk.f32.vlgmr.msra.gmra.mrb[0].mxu1 %vm123_vm1, %v222_v32 }
 0x2f0   :  { %2049 = vmatpush3.bf16.msra.mxu1 %v2452_v6  ;;  %1982 = vmatprep.mubr.msk.f32.mxu1 %vm2389_vm0, %v2390_v1 }
 0x2f1   :  { %2050 = vmatprep.subr.bf16.mxu1 %v2388_v0 }
 0x2f4   :  { %2052 = vmatpush3.bf16.msra.mxu1 %v2458_v9 }
 0x2f5   :  { %2059 = vmatprep.subr.bf16.mxu1 %v2388_v0 }
 0x3c2   :  { %v291_v36 = vpop.f32.mrb[0].mxu1 }
 0x3c3   :  { %v295_v37 = vadd.f32 %v291_v36, %v112_v35  ;;  %v1962_v38 = vpop.f32.mrb[1].mxu1 }
 0x3c5   :  { %2228 = vtanh.f32 %v295_v37  ;;  %v296_v40 = vmul.f32 0.5, %v295_v37 }
 0x3c7   :  { %2230 = vtanh.f32 %v296_v40 }
 0x3cf   :  { %v2229_v39 = vpop.eup %2228 }
 0x3d0   :  { %303 = vrot.lane.b32.xlu0 %v2229_v39, %s2392_s17 }
 0x3d1   :  { %v2231_v41 = vpop.eup %2230 }
 0x3d2   :  { %v298_v42 = vmul.f32 0.5, %v2231_v41 }
 0x3d4   :  { %v299_v43 = vadd.f32 0.5, %v298_v42 }
 0x3d6   :  { %v301_v46 = vmul.f32 %v299_v43, %v213_v27 }
 0x442   :  { %v304_v44 = vpop.permute.xlu0 %303 }
 0x443   :  { %v306_v45 = vmul.f32 %v304_v44, %v299_v43 }
 0x445   :  { %308 = vrot.lane.b32.xlu1 %v306_v45, %s2393_s18 }
 0x4b7   :  { %v309_v47 = vpop.permute.xlu1 %308 }
 0x4b8   :  { %v311_v48 = vadd.f32 %v309_v47, %v301_v46 }
 0x4ba   :  { %2232 = vtanh.f32 %v311_v48 }
 0x4c4   :  { %v2233_v49 = vpop.eup %2232 }
 0x4c5   :  { %314 = vrot.lane.b32.xlu0 %v2233_v49, %s2392_s17 }
 0x4c9   :  { %66 = vperm.xlu0 %2220, %v47_v50  }
 0x537   :  { %v315_v51 = vpop.permute.xlu0 %314 }
 0x538   :  { %v317_v52 = vmul.f32 %v315_v51, %v299_v43 }
 0x53a   :  { %319 = vrot.lane.b32.xlu1 %v317_v52, %s2393_s18 }
 0x548   :  { %v67_v54 = vpop.permute.xlu0 %66 }
 0x549   :  { %v100_v55 = vmul.f32 %v2474_v10, %v67_v54 }
 0x54b   :  { %v113_v56 = vadd.f32 %v2477_v13, %v100_v55  ;;  %v50_v55 = vld [vmem:[%s2811_s0 + $0xa] sm:$0x3] }
 0x5ac   :  { %v320_v53 = vpop.permute.xlu1 %319 }
 0x5ad   :  { %1972 = vmatmul.mubr.msk.f32.vlgmr.msra.gmra.mrb[2].mxu0 %vm123_vm1, %v320_v53 }
 0x5ae   :  { %2055 = vmatpush3.bf16.msra.mxu0 %v2452_v6  ;;  %1993 = vmatprep.mubr.msk.f32.mxu0 %vm2389_vm0, %v2390_v1 }
 0x5af   :  { %2056 = vmatprep.subr.bf16.mxu0 %v2388_v0 }
 0x5b2   :  { %2058 = vmatpush3.bf16.msra.mxu0 %v2458_v9 }
 0x5b3   :  { %2065 = vmatprep.subr.bf16.mxu0 %v2388_v0 }
 0x680   :  { %v389_v57 = vpop.f32.mrb[2].mxu0 }
 0x681   :  { %v393_v58 = vadd.f32 %v389_v57, %v113_v56  ;;  %v1973_v59 = vpop.f32.mrb[3].mxu0 }
 0x683   :  { %2234 = vtanh.f32 %v393_v58  ;;  %v394_v61 = vmul.f32 0.5, %v393_v58 }
 0x685   :  { %2236 = vtanh.f32 %v394_v61 }
 0x68d   :  { %v2235_v60 = vpop.eup %2234 }
 0x68e   :  { %401 = vrot.lane.b32.xlu1 %v2235_v60, %s2392_s17 }
 0x68f   :  { %v2237_v62 = vpop.eup %2236 }
 0x690   :  { %v396_v63 = vmul.f32 0.5, %v2237_v62 }
 0x692   :  { %v397_v2 = vadd.f32 0.5, %v396_v63 }
 0x694   :  { %v399_v5 = vmul.f32 %v397_v2, %v311_v48 }
 0x700   :  { %v402_v3 = vpop.permute.xlu1 %401 }
 0x701   :  { %v404_v4 = vmul.f32 %v402_v3, %v397_v2 }
 0x703   :  { %406 = vrot.lane.b32.xlu0 %v404_v4, %s2393_s18 }
 0x775   :  { %v407_v7 = vpop.permute.xlu0 %406 }
 0x776   :  { %v409_v8 = vadd.f32 %v407_v7, %v399_v5 }
 0x778   :  { %2238 = vtanh.f32 %v409_v8 }
 0x782   :  { %v2239_v11 = vpop.eup %2238 }
 0x783   :  { %412 = vrot.lane.b32.xlu1 %v2239_v11, %s2392_s17 }
 0x787   :  { %71 = vperm.xlu1 %2221, %v48_v12  }
 0x7f5   :  { %v413_v14 = vpop.permute.xlu1 %412 }
 0x7f6   :  { %v415_v15 = vmul.f32 %v413_v14, %v397_v2 }
 0x7f8   :  { %417 = vrot.lane.b32.xlu0 %v415_v15, %s2393_s18  ;;  %v51_v15 = vld [vmem:[%s2811_s0 + $0xc] sm:$0x3] }
 0x806   :  { %v72_v17 = vpop.permute.xlu1 %71 }
 0x807   :  { %v101_v18 = vmul.f32 %v2474_v10, %v72_v17 }
 0x809   :  { %v114_v19 = vadd.f32 %v2477_v13, %v101_v18 }
 0x86a   :  { %v418_v16 = vpop.permute.xlu0 %417 }
 0x86b   :  { %1983 = vmatmul.mubr.msk.f32.vlgmr.msra.gmra.mrb[2].mxu1 %vm123_vm1, %v418_v16 }
 0x86c   :  { %2061 = vmatpush3.bf16.msra.mxu1 %v2452_v6  ;;  %2004 = vmatprep.mubr.msk.f32.mxu1 %vm2389_vm0, %v2390_v1 }
 0x86d   :  { %2062 = vmatprep.subr.bf16.mxu1 %v2388_v0 }
 0x870   :  { %2064 = vmatpush3.bf16.msra.mxu1 %v2458_v9 }
 0x871   :  { %2071 = vmatprep.subr.bf16.mxu1 %v2388_v0 }
 0x93e   :  { %v487_v20 = vpop.f32.mrb[2].mxu1 }
 0x93f   :  { %v491_v21 = vadd.f32 %v487_v20, %v114_v19  ;;  %v1984_v22 = vpop.f32.mrb[3].mxu1 }
 0x941   :  { %2240 = vtanh.f32 %v491_v21  ;;  %v492_v24 = vmul.f32 0.5, %v491_v21 }
 0x943   :  { %2242 = vtanh.f32 %v492_v24 }
 0x94b   :  { %v2241_v23 = vpop.eup %2240 }
 0x94c   :  { %499 = vrot.lane.b32.xlu0 %v2241_v23, %s2392_s17 }
 0x94d   :  { %v2243_v25 = vpop.eup %2242 }
 0x94e   :  { %v494_v26 = vmul.f32 0.5, %v2243_v25 }
 0x950   :  { %v495_v27 = vadd.f32 0.5, %v494_v26 }
 0x952   :  { %v497_v30 = vmul.f32 %v495_v27, %v409_v8 }
 0x9be   :  { %v500_v28 = vpop.permute.xlu0 %499 }
 0x9bf   :  { %v502_v29 = vmul.f32 %v500_v28, %v495_v27 }
 0x9c1   :  { %504 = vrot.lane.b32.xlu1 %v502_v29, %s2393_s18 }
 0xa33   :  { %v505_v31 = vpop.permute.xlu1 %504 }
 0xa34   :  { %v507_v32 = vadd.f32 %v505_v31, %v497_v30 }
 0xa36   :  { %2244 = vtanh.f32 %v507_v32 }
 0xa40   :  { %v2245_v33 = vpop.eup %2244 }
 0xa41   :  { %510 = vrot.lane.b32.xlu0 %v2245_v33, %s2392_s17 }
 0xa45   :  { %76 = vperm.xlu0 %2220, %v49_v34  }
 0xab3   :  { %v511_v35 = vpop.permute.xlu0 %510 }
 0xab4   :  { %v513_v36 = vmul.f32 %v511_v35, %v495_v27 }
 0xab6   :  { %515 = vrot.lane.b32.xlu1 %v513_v36, %s2393_s18  ;;  %v52_v36 = vld [vmem:[%s2811_s0 + $0xe] sm:$0x3]  ;;  %s2394_s0 = smov 127  }
 0xac4   :  { %v77_v38 = vpop.permute.xlu0 %76 }
 0xac5   :  { %v102_v39 = vmul.f32 %v2474_v10, %v77_v38 }
 0xac7   :  { %v115_v40 = vadd.f32 %v2477_v13, %v102_v39 }
 0xb28   :  { %v516_v37 = vpop.permute.xlu1 %515 }
 0xb29   :  { %1994 = vmatmul.mubr.msk.f32.vlgmr.msra.gmra.mrb[4].mxu0 %vm123_vm1, %v516_v37 }
 0xb2a   :  { %2067 = vmatpush3.bf16.msra.mxu0 %v2452_v6  ;;  %2015 = vmatprep.mubr.msk.f32.mxu0 %vm2389_vm0, %v2390_v1 }
 0xb2b   :  { %2068 = vmatprep.subr.bf16.mxu0 %v2388_v0 }
 0xb2e   :  { %2070 = vmatpush3.bf16.msra.mxu0 %v2458_v9 }
 0xbfc   :  { %v585_v41 = vpop.f32.mrb[4].mxu0 }
 0xbfd   :  { %v589_v42 = vadd.f32 %v585_v41, %v115_v40  ;;  %v1995_v43 = vpop.f32.mrb[5].mxu0 }
 0xbff   :  { %2246 = vtanh.f32 %v589_v42  ;;  %v590_v45 = vmul.f32 0.5, %v589_v42 }
 0xc01   :  { %2248 = vtanh.f32 %v590_v45 }
 0xc09   :  { %v2247_v44 = vpop.eup %2246 }
 0xc0a   :  { %597 = vrot.lane.b32.xlu1 %v2247_v44, %s2392_s17 }
 0xc0b   :  { %v2249_v46 = vpop.eup %2248 }
 0xc0c   :  { %v592_v47 = vmul.f32 0.5, %v2249_v46 }
 0xc0e   :  { %v593_v48 = vadd.f32 0.5, %v592_v47 }
 0xc10   :  { %v595_v51 = vmul.f32 %v593_v48, %v507_v32 }
 0xc7c   :  { %v598_v49 = vpop.permute.xlu1 %597 }
 0xc7d   :  { %v600_v50 = vmul.f32 %v598_v49, %v593_v48 }
 0xc7f   :  { %602 = vrot.lane.b32.xlu0 %v600_v50, %s2393_s18 }
 0xcf1   :  { %v603_v52 = vpop.permute.xlu0 %602 }
 0xcf2   :  { %v605_v53 = vadd.f32 %v603_v52, %v595_v51 }
 0xcf4   :  { %2250 = vtanh.f32 %v605_v53 }
 0xcfe   :  { %v2251_v54 = vpop.eup %2250 }
 0xcff   :  { %608 = vrot.lane.b32.xlu1 %v2251_v54, %s2392_s17 }
 0xd03   :  { %81 = vperm.xlu1 %2221, %v50_v55  }
 0xd71   :  { %v609_v56 = vpop.permute.xlu1 %608 }
 0xd72   :  { %v611_v57 = vmul.f32 %v609_v56, %v593_v48 }
 0xd74   :  { %613 = vrot.lane.b32.xlu0 %v611_v57, %s2393_s18 }
 0xd82   :  { %v82_v59 = vpop.permute.xlu1 %81 }
 0xd83   :  { %v103_v60 = vmul.f32 %v2474_v10, %v82_v59  ;;  %v958_v59 = vld [vmem:[#allocation4 + $0x18] sm:$0xff] }
 0xd85   :  { %v116_v61 = vadd.f32 %v2477_v13, %v103_v60  ;;  %v960_v60 = vld [vmem:[#allocation4 + $0x28] sm:$0xff] }
 0xde6   :  { %v614_v58 = vpop.permute.xlu0 %613 }
 0xde7   :  { %2005 = vmatmul.mubr.msk.f32.vlgmr.msra.gmra.mrb[4].mxu1 %vm123_vm1, %v614_v58 }
 0xde8   :  { %2073 = vmatpush3.bf16.msra.mxu1 %v2452_v6  ;;  %2026 = vmatprep.mubr.msk.f32.mxu1 %vm2389_vm0, %v2390_v1 }
 0xde9   :  { %2074 = vmatprep.subr.bf16.mxu1 %v2388_v0 }
 0xdec   :  { %2076 = vmatpush3.bf16.msra.mxu1 %v2458_v9 }
 0xeba   :  { %v683_v62 = vpop.f32.mrb[4].mxu1 }
 0xebb   :  { %v687_v63 = vadd.f32 %v683_v62, %v116_v61  ;;  %v2006_v2 = vpop.f32.mrb[5].mxu1  ;;  %v957_v61 = vld [vmem:[#allocation4 + $0x10] sm:$0xff]  ;;  %v2077_v62 = vpack.c.bf16 %v960_v60, %v958_v59  ;;  %v982_v59 = vld [vmem:[#allocation4 + $0xd8] sm:$0xff]  ;;  %v984_v60 = vld [vmem:[#allocation4 + $0xe8] sm:$0xff] }
 0xebc   :  { %v962_v2 = vld [vmem:[#allocation4 + $0x38] sm:$0xff] }
 0xebd   :  { %2252 = vtanh.f32 %v687_v63  ;;  %v688_v6 = vmul.f32 0.5, %v687_v63  ;;  %v959_v63 = vld [vmem:[#allocation4 + $0x20] sm:$0xff]  ;;  %2078 = vmatprep.subr.bf16.mxu0 %v2077_v62  ;;  %v2619_v62 = vpack.c.bf16 %v984_v60, %v982_v59 }
 0xebf   :  { %2254 = vtanh.f32 %v688_v6  ;;  %v2079_v6 = vpack.c.bf16 %v959_v63, %v957_v61  ;;  %v981_v63 = vld [vmem:[#allocation4 + $0xd0] sm:$0xff] }
 0xec7   :  { %v2253_v3 = vpop.eup %2252 }
 0xec8   :  { %695 = vrot.lane.b32.xlu0 %v2253_v3, %s2392_s17  ;;  %v964_v3 = vld [vmem:[#allocation4 + $0x48] sm:$0xff] }
 0xec9   :  { %v2255_v4 = vpop.eup %2254 }
 0xeca   :  { %v690_v5 = vmul.f32 0.5, %v2255_v4  ;;  %v2081_v4 = vpack.c.bf16 %v964_v3, %v962_v2  ;;  %v983_v2 = vld [vmem:[#allocation4 + $0xe0] sm:$0xff]  ;;  %v986_v3 = vld [vmem:[#allocation4 + $0xf8] sm:$0xff] }
 0xecc   :  { %v691_v7 = vadd.f32 0.5, %v690_v5  ;;  %v961_v5 = vld [vmem:[#allocation4 + $0x30] sm:$0xff] }
 0xece   :  { %v693_v9 = vmul.f32 %v691_v7, %v605_v53  ;;  %v2582_v53 = vld [vmem:[#allocation4 + $0x3] ss:$0 sm:$0xff] }
 0xf3a   :  { %v696_v0 = vpop.permute.xlu0 %695 }
 0xf3b   :  { %v698_v8 = vmul.f32 %v696_v0, %v691_v7  ;;  %v966_v0 = vld [vmem:[#allocation4 + $0x58] sm:$0xff] }
 0xf3d   :  { %700 = vrot.lane.b32.xlu1 %v698_v8, %s2393_s18  ;;  %v968_v8 = vld [vmem:[#allocation4 + $0x68] sm:$0xff] }
 0xfaf   :  { %v701_v11 = vpop.permute.xlu1 %700 }
 0xfb0   :  { %v703_v12 = vadd.f32 %v701_v11, %v693_v9  ;;  %v2085_v11 = vpack.c.bf16 %v968_v8, %v966_v0  ;;  %v987_v0 = vld [vmem:[#allocation4 + $0x100] sm:$0xff] }
 0xfb2   :  { %2256 = vtanh.f32 %v703_v12 }
 0xfbc   :  { %v2257_v14 = vpop.eup %2256 }
 0xfbd   :  { %706 = vrot.lane.b32.xlu0 %v2257_v14, %s2392_s17  ;;  %v967_v14 = vld [vmem:[#allocation4 + $0x60] sm:$0xff] }
 0xfc1   :  { %86 = vperm.xlu0 %2220, %v51_v15  }
0x102f   :  { %v707_v16 = vpop.permute.xlu0 %706 }
0x1030   :  { %v709_v17 = vmul.f32 %v707_v16, %v691_v7  ;;  %v963_v7 = vld [vmem:[#allocation4 + $0x40] sm:$0xff]  ;;  %v970_v16 = vld [vmem:[#allocation4 + $0x78] sm:$0xff] }
0x1031   :  { %v2083_v9 = vpack.c.bf16 %v963_v7, %v961_v5  ;;  %v985_v7 = vld [vmem:[#allocation4 + $0xf0] sm:$0xff] }
0x1032   :  { %711 = vrot.lane.b32.xlu1 %v709_v17, %s2393_s18  ;;  %v972_v17 = vld [vmem:[#allocation4 + $0x88] sm:$0xff]  ;;  %v2631_v8 = vpack.c.bf16 %v987_v0, %v985_v7 }
0x1040   :  { %v87_v19 = vpop.permute.xlu0 %86 }
0x1041   :  { %v104_v20 = vmul.f32 %v2474_v10, %v87_v19  ;;  %v2089_v19 = vpack.c.bf16 %v972_v17, %v970_v16 }
0x1043   :  { %v117_v21 = vadd.f32 %v2477_v13, %v104_v20  ;;  %v969_v20 = vld [vmem:[#allocation4 + $0x70] sm:$0xff] }
0x10a4   :  { %v712_v18 = vpop.permute.xlu1 %711 }
0x10a5   :  { %2016 = vmatmul.mubr.msk.f32.vlgmr.msra.gmra.mrb[6].mxu0 %vm123_vm1, %v712_v18 }
0x10a6   :  { %1057 = vmatprep.mubr.f32.mxu0 %v2390_v1  ;;  %2080 = vmatpush1.bf16.msra.mxu0 %v2079_v6  ;;  %v988_v6 = vld [vmem:[#allocation4 + $0x108] sm:$0xff] }
0x10a7   :  { %2082 = vmatprep.subr.bf16.mxu0 %v2081_v4  ;;  %v2623_v4 = vpack.c.bf16 %v983_v2, %v981_v63  ;;  %v2627_v5 = vpack.c.bf16 %v988_v6, %v986_v3 }
0x10aa   :  { %2084 = vmatpush1.bf16.msra.mxu0 %v2083_v9 }
0x10ab   :  { %2086 = vmatprep.subr.bf16.mxu0 %v2085_v11 }
0x1178   :  { %v781_v22 = vpop.f32.mrb[6].mxu0 }
0x1179   :  { %v785_v23 = vadd.f32 %v781_v22, %v117_v21  ;;  %v2017_v24 = vpop.f32.mrb[7].mxu0  ;;  %v971_v21 = vld [vmem:[#allocation4 + $0x80] sm:$0xff] }
0x117a   :  { %v2091_v22 = vpack.c.bf16 %v971_v21, %v969_v20 }
0x117b   :  { %2258 = vtanh.f32 %v785_v23  ;;  %v786_v26 = vmul.f32 0.5, %v785_v23 }
0x117d   :  { %2260 = vtanh.f32 %v786_v26 }
0x1185   :  { %v2259_v25 = vpop.eup %2258 }
0x1186   :  { %793 = vrot.lane.b32.xlu1 %v2259_v25, %s2392_s17 }
0x1187   :  { %v2261_v27 = vpop.eup %2260 }
0x1188   :  { %v788_v28 = vmul.f32 0.5, %v2261_v27 }
0x118a   :  { %v789_v29 = vadd.f32 0.5, %v788_v28 }
0x118c   :  { %v791_v32 = vmul.f32 %v789_v29, %v703_v12  ;;  %v965_v12 = vld [vmem:[#allocation4 + $0x50] sm:$0xff] }
0x118d   :  { %v2087_v18 = vpack.c.bf16 %v967_v14, %v965_v12 }
0x118f   :  { %2088 = vmatpush1.bf16.msra.mxu0 %v2087_v18 }
0x1190   :  { %2090 = vmatprep.subr.bf16.mxu0 %v2089_v19 }
0x1193   :  { %2092 = vmatpush1.bf16.msra.mxu0 %v2091_v22  ;;  %v944_v22 = vld [vmem:[#allocation4 + $0x1] ss:$8 sm:$0x3] }
0x11f8   :  { %v794_v30 = vpop.permute.xlu1 %793 }
0x11f9   :  { %v796_v31 = vmul.f32 %v794_v30, %v789_v29 }
0x11fb   :  { %798 = vrot.lane.b32.xlu0 %v796_v31, %s2393_s18 }
0x126d   :  { %v799_v33 = vpop.permute.xlu0 %798 }
0x126e   :  { %v801_v34 = vadd.f32 %v799_v33, %v791_v32  ;;  %v933_v32 = vlaneseq }
0x1270   :  { %2262 = vtanh.f32 %v801_v34  ;;  %v2597_v33 = vshrl.u32 %v933_v32, 7 }
0x127a   :  { %v2263_v35 = vpop.eup %2262 }
0x127b   :  { %804 = vrot.lane.b32.xlu1 %v2263_v35, %s2392_s17  ;;  %v931_v35 = vld [vmem:[#allocation4] ss:$8 sm:$0x3] }
0x127f   :  { %91 = vperm.xlu1 %2221, %v52_v36  }
0x12ed   :  { %v805_v37 = vpop.permute.xlu1 %804 }
0x12ee   :  { %v807_v38 = vmul.f32 %v805_v37, %v789_v29  ;;  %v939_v37 = vsub.s32 1, %v2597_v33 }
0x12f0   :  { %809 = vrot.lane.b32.xlu0 %v807_v38, %s2393_s18 }
0x12fe   :  { %v92_v40 = vpop.permute.xlu1 %91 }
0x12ff   :  { %v105_v41 = vmul.f32 %v2474_v10, %v92_v40  ;;  %v907_v10 = vld [vmem:[%s2812_s1] sm:$0x3]  ;;  %s2395_s1 = smov 96   ;;  %v940_v40 = vrot.slane %v931_v35, %v939_v37 }
0x1300   :  { %v908_v56 = vmul.f32 %v907_v10, %v2582_v53  ;;  %v975_v10 = vld [vmem:[#allocation4 + $0xa0] sm:$0xff] }
0x1301   :  { %v118_v42 = vadd.f32 %v2477_v13, %v105_v41 }
0x1362   :  { %v810_v39 = vpop.permute.xlu0 %809 }
0x1363   :  { %2027 = vmatmul.mubr.msk.f32.vlgmr.msra.gmra.mrb[6].mxu1 %vm123_vm1, %v810_v39 }
0x1364   :  { %1157 = vmatprep.mubr.f32.mxu1 %v2390_v1 }
0x1436   :  { %v879_v43 = vpop.f32.mrb[6].mxu1 }
0x1437   :  { %v883_v44 = vadd.f32 %v879_v43, %v118_v42  ;;  %v2028_v45 = vpop.f32.mrb[7].mxu1 }
0x1439   :  { %2264 = vtanh.f32 %v883_v44  ;;  %v884_v47 = vmul.f32 0.5, %v883_v44 }
0x143b   :  { %2266 = vtanh.f32 %v884_v47 }
0x1443   :  { %v2265_v46 = vpop.eup %2264 }
0x1444   :  { %891 = vrot.lane.b32.xlu0 %v2265_v46, %s2392_s17 }
0x1445   :  { %v2267_v48 = vpop.eup %2266 }
0x1446   :  { %v886_v49 = vmul.f32 0.5, %v2267_v48 }
0x1448   :  { %v887_v50 = vadd.f32 0.5, %v886_v49  ;;  %v974_v49 = vld [vmem:[#allocation4 + $0x98] sm:$0xff] }
0x144a   :  { %v889_v13 = vmul.f32 %v887_v50, %v801_v34  ;;  %v935_v34 = vsub.s32 0, %v2597_v33 }
0x144c   :  { %v936_v36 = vrot.slane %v931_v35, %v935_v34 }
0x14b6   :  { %v892_v51 = vpop.permute.xlu0 %891 }
0x14b7   :  { %v894_v52 = vmul.f32 %v892_v51, %v887_v50  ;;  %v973_v51 = vld [vmem:[#allocation4 + $0x90] sm:$0xff] }
0x14b9   :  { %896 = vrot.lane.b32.xlu1 %v894_v52, %s2393_s18 }
0x14bd   :  { %910 = vrot.lane.b32.xlu1 %v2582_v53, %s2394_s0 }
0x152b   :  { %v897_v54 = vpop.permute.xlu1 %896 }
0x152c   :  { %v899_v55 = vadd.f32 %v897_v54, %v889_v13  ;;  %v978_v13 = vld [vmem:[#allocation4 + $0xb8] sm:$0xff]  ;;  %v980_v54 = vld [vmem:[#allocation4 + $0xc8] sm:$0xff] }
0x152e   :  { %2268 = vtanh.f32 %v899_v55 }
0x152f   :  { %v911_v57 = vpop.permute.xlu1 %910 }
0x1530   :  { %v913_v58 = vadd.f32 %v911_v57, %v908_v56  ;;  %v2610_v56 = vpack.c.bf16 %v980_v54, %v978_v13  ;;  %v977_v57 = vld [vmem:[#allocation4 + $0xb0] sm:$0xff] }
0x1532   :  { %919 = vrot.lane.b32.xlu1 %v913_v58, %s2393_s18  ;;  %v979_v58 = vld [vmem:[#allocation4 + $0xc0] sm:$0xff] }
0x1533   :  { %v2615_v61 = vpack.c.bf16 %v979_v58, %v977_v57 }
0x1538   :  { %v2269_v15 = vpop.eup %2268 }
0x1539   :  { %902 = vrot.lane.b32.xlu0 %v2269_v15, %s2392_s17 }
0x15a4   :  { %v920_v25 = vpop.permute.xlu1 %919 }
0x15ab   :  { %v903_v23 = vpop.permute.xlu0 %902 }
0x15ac   :  { %v905_v24 = vmul.f32 %v903_v23, %v887_v50  ;;  %v976_v50 = vld [vmem:[#allocation4 + $0xa8] sm:$0xff]  ;;  %v2656_v23 = vrot.slane %v944_v22, %v935_v34 }
0x15ad   :  { %v2606_v52 = vpack.c.bf16 %v976_v50, %v974_v49 }
0x15ae   :  { %915 = vrot.lane.b32.xlu0 %v905_v24, %s2393_s18 }
0x15af   :  { %2094 = vmatprep.subr.bf16.mxu1 %v2606_v52  ;;  %2110 = vmatprep.subr.bf16.mxu0 %v2606_v52 }
0x15b2   :  { %926 = vrot.lane.b32.xlu0 %v899_v55, %s2395_s1  ;;  %v2608_v55 = vpack.c.bf16 %v975_v10, %v973_v51 }
0x15b4   :  { %2096 = vmatpush1.bf16.msra.mxu1 %v2608_v55 }
0x15b5   :  { %2098 = vmatprep.subr.bf16.mxu1 %v2610_v56 }
0x15b8   :  { %2100 = vmatpush1.bf16.msra.mxu1 %v2615_v61 }
0x15b9   :  { %2102 = vmatprep.subr.bf16.mxu1 %v2619_v62 }
0x15bc   :  { %2104 = vmatpush1.bf16.msra.mxu1 %v2623_v4 }
0x15bd   :  { %2106 = vmatprep.subr.bf16.mxu1 %v2627_v5 }
0x15c0   :  { %2108 = vmatpush1.bf16.msra.mxu1 %v2631_v8 }
0x15c1   :  { %2126 = vmatprep.subr.bf16.mxu1 %v2606_v52 }
0x1620   :  { %v916_v26 = vpop.permute.xlu0 %915 }
0x1621   :  { %v922_v27 = vsel %vm123_vm1, %v916_v26, %v920_v25 }
0x1622   :  { %v924_v28 = vsel %vm923_vm2, %v922_v27, 0.0 }
0x1623   :  { %1893 = vmatmul.mubr.msk.f32.vlgmr.msra.gmra.mrb[8].mxu0 %vm989_vm3, %v924_v28 }
0x1624   :  { %v927_v29 = vpop.permute.xlu0 %926  ;;  %1253 = vmatprep.mubr.f32.mxu0 %v2390_v1  ;;  %2112 = vmatpush1.bf16.msra.mxu0 %v2608_v55 }
0x1625   :  { %v929_v30 = vsel %vm123_vm1, %v927_v29, %v920_v25  ;;  %2114 = vmatprep.subr.bf16.mxu0 %v2610_v56  ;;  %v2660_v25 = vrot.slane %v944_v22, %v939_v37 }
0x1626   :  { %v930_v31 = vsel %vm923_vm2, %v929_v30, 0.0 }
0x1627   :  { %1076 = vrot.lane.b32.xlu1 %v930_v31, %s2392_s17 }
0x1628   :  { %2116 = vmatpush1.bf16.msra.mxu0 %v2615_v61 }
0x1629   :  { %2118 = vmatprep.subr.bf16.mxu0 %v2619_v62 }
0x162c   :  { %2120 = vmatpush1.bf16.msra.mxu0 %v2623_v4 }
0x162d   :  { %2122 = vmatprep.subr.bf16.mxu0 %v2627_v5 }
0x1630   :  { %2124 = vmatpush1.bf16.msra.mxu0 %v2631_v8 }
0x1631   :  { %2142 = vmatprep.subr.bf16.mxu0 %v2606_v52 }
0x1699   :  { %v1077_v11 = vpop.permute.xlu1 %1076 }
0x16f6   :  { %v1059_v38 = vpop.f32.mrb[8].mxu0 }
0x16f7   :  { %v1064_v39 = vadd.f32 %v1059_v38, %v936_v36  ;;  %v1061_v41 = vpop.f32.mrb[9].mxu0 }
0x16f8   :  { %v1065_v43 = vadd.f32 %v1061_v41, %v940_v40 }
0x16f9   :  { %v1066_v42 = vmul.f32 0.5, %v1064_v39 }
0x16fa   :  { %v1067_v9 = vmul.f32 0.5, %v1065_v43 }
0x16fb   :  { %2270 = vtanh.f32 %v1066_v42 }
0x16fc   :  { %2272 = vtanh.f32 %v1065_v43 }
0x16fd   :  { %2274 = vtanh.f32 %v1067_v9 }
0x1705   :  { %v2271_v44 = vpop.eup %2270 }
0x1706   :  { %v1070_v45 = vmul.f32 0.5, %v2271_v44  ;;  %v2273_v47 = vpop.eup %2272 }
0x1707   :  { %v2275_v16 = vpop.eup %2274 }
0x1708   :  { %v1072_v46 = vadd.f32 0.5, %v1070_v45  ;;  %v1071_v17 = vmul.f32 0.5, %v2275_v16 }
0x170a   :  { %v1080_v48 = vmul.f32 %v2273_v47, %v1072_v46  ;;  %v1079_v12 = vmul.f32 %v1077_v11, %v1072_v46  ;;  %v1073_v18 = vadd.f32 0.5, %v1071_v17 }
0x170c   :  { %1082 = vrot.lane.b32.xlu0 %v1080_v48, %s2392_s17 }
0x177e   :  { %v1083_v14 = vpop.permute.xlu0 %1082 }
0x177f   :  { %v1085_v15 = vadd.f32 %v1083_v14, %v1079_v12 }
0x1781   :  { %2276 = vtanh.f32 %v1085_v15 }
0x178b   :  { %v2277_v19 = vpop.eup %2276 }
0x178c   :  { %v2640_v20 = vmul.f32 %v2277_v19, %v1073_v18 }
0x178e   :  { %1089 = vrot.lane.b32.xlu1 %v2640_v20, %s2392_s17 }
0x1800   :  { %v1090_v21 = vpop.permute.xlu1 %1089 }
0x1801   :  { %1894 = vmatmul.mubr.msk.f32.vlgmr.msra.gmra.mrb[8].mxu1 %vm989_vm3, %v1090_v21 }
0x1802   :  { %2128 = vmatpush1.bf16.msra.mxu1 %v2608_v55  ;;  %1349 = vmatprep.mubr.f32.mxu1 %v2390_v1 }
0x1803   :  { %2130 = vmatprep.subr.bf16.mxu1 %v2610_v56 }
0x1806   :  { %2132 = vmatpush1.bf16.msra.mxu1 %v2615_v61 }
0x1807   :  { %2134 = vmatprep.subr.bf16.mxu1 %v2619_v62 }
0x180a   :  { %2136 = vmatpush1.bf16.msra.mxu1 %v2623_v4 }
0x180b   :  { %2138 = vmatprep.subr.bf16.mxu1 %v2627_v5 }
0x180e   :  { %2140 = vmatpush1.bf16.msra.mxu1 %v2631_v8 }
0x180f   :  { %2158 = vmatprep.subr.bf16.mxu1 %v2606_v52 }
0x18d4   :  { %v1159_v24 = vpop.f32.mrb[8].mxu1 }
0x18d5   :  { %v1164_v26 = vadd.f32 %v1159_v24, %v2656_v23  ;;  %v1161_v27 = vpop.f32.mrb[9].mxu1 }
0x18d6   :  { %v1165_v29 = vadd.f32 %v1161_v27, %v2660_v25 }
0x18d7   :  { %v1166_v28 = vmul.f32 0.5, %v1164_v26 }
0x18d8   :  { %v1167_v34 = vmul.f32 0.5, %v1165_v29 }
0x18d9   :  { %2278 = vtanh.f32 %v1166_v28 }
0x18da   :  { %2280 = vtanh.f32 %v1165_v29 }
0x18db   :  { %2282 = vtanh.f32 %v1167_v34 }
0x18e3   :  { %v2279_v30 = vpop.eup %2278 }
0x18e4   :  { %v1170_v31 = vmul.f32 0.5, %v2279_v30  ;;  %v2281_v35 = vpop.eup %2280 }
0x18e5   :  { %v2283_v39 = vpop.eup %2282 }
0x18e6   :  { %v1172_v32 = vadd.f32 0.5, %v1170_v31  ;;  %v1171_v40 = vmul.f32 0.5, %v2283_v39 }
0x18e8   :  { %v1176_v36 = vmul.f32 %v2281_v35, %v1172_v32  ;;  %v1175_v33 = vmul.f32 %v1172_v32, %v1085_v15  ;;  %v1173_v41 = vadd.f32 0.5, %v1171_v40 }
0x18ea   :  { %1178 = vrot.lane.b32.xlu0 %v1176_v36, %s2392_s17 }
0x195c   :  { %v1179_v37 = vpop.permute.xlu0 %1178 }
0x195d   :  { %v1181_v38 = vadd.f32 %v1179_v37, %v1175_v33 }
0x195f   :  { %2284 = vtanh.f32 %v1181_v38 }
0x1969   :  { %v2285_v42 = vpop.eup %2284 }
0x196a   :  { %v2665_v43 = vmul.f32 %v2285_v42, %v1173_v41 }
0x196c   :  { %1185 = vrot.lane.b32.xlu1 %v2665_v43, %s2392_s17 }
0x19de   :  { %v1186_v44 = vpop.permute.xlu1 %1185 }
0x19df   :  { %1895 = vmatmul.mubr.msk.f32.vlgmr.msra.gmra.mrb[10].mxu0 %vm989_vm3, %v1186_v44 }
0x19e0   :  { %2144 = vmatpush1.bf16.msra.mxu0 %v2608_v55  ;;  %1445 = vmatprep.mubr.f32.mxu0 %v2390_v1 }
0x19e1   :  { %2146 = vmatprep.subr.bf16.mxu0 %v2610_v56 }
0x19e4   :  { %2148 = vmatpush1.bf16.msra.mxu0 %v2615_v61 }
0x19e5   :  { %2150 = vmatprep.subr.bf16.mxu0 %v2619_v62 }
0x19e8   :  { %2152 = vmatpush1.bf16.msra.mxu0 %v2623_v4 }
0x19e9   :  { %2154 = vmatprep.subr.bf16.mxu0 %v2627_v5 }
0x19ec   :  { %2156 = vmatpush1.bf16.msra.mxu0 %v2631_v8 }
0x19ed   :  { %2174 = vmatprep.subr.bf16.mxu0 %v2606_v52 }
0x1ab2   :  { %v1255_v45 = vpop.f32.mrb[10].mxu0 }
0x1ab3   :  { %v1260_v46 = vadd.f32 %v1255_v45, %v2656_v23  ;;  %v1257_v47 = vpop.f32.mrb[11].mxu0 }
0x1ab4   :  { %v1261_v49 = vadd.f32 %v1257_v47, %v2660_v25 }
0x1ab5   :  { %v1262_v48 = vmul.f32 0.5, %v1260_v46 }
0x1ab6   :  { %v1263_v57 = vmul.f32 0.5, %v1261_v49 }
0x1ab7   :  { %2286 = vtanh.f32 %v1262_v48 }
0x1ab8   :  { %2288 = vtanh.f32 %v1261_v49 }
0x1ab9   :  { %2290 = vtanh.f32 %v1263_v57 }
0x1ac1   :  { %v2287_v50 = vpop.eup %2286 }
0x1ac2   :  { %v1266_v51 = vmul.f32 0.5, %v2287_v50  ;;  %v2289_v13 = vpop.eup %2288 }
0x1ac3   :  { %v2291_v63 = vpop.eup %2290 }
0x1ac4   :  { %v1268_v10 = vadd.f32 0.5, %v1266_v51  ;;  %v1267_v2 = vmul.f32 0.5, %v2291_v63 }
0x1ac6   :  { %v1272_v54 = vmul.f32 %v2289_v13, %v1268_v10  ;;  %v1271_v58 = vmul.f32 %v1268_v10, %v1181_v38  ;;  %v1269_v3 = vadd.f32 0.5, %v1267_v2 }
0x1ac8   :  { %1274 = vrot.lane.b32.xlu0 %v1272_v54, %s2392_s17 }
0x1b3a   :  { %v1275_v59 = vpop.permute.xlu0 %1274 }
0x1b3b   :  { %v1277_v60 = vadd.f32 %v1275_v59, %v1271_v58 }
0x1b3d   :  { %2292 = vtanh.f32 %v1277_v60 }
0x1b47   :  { %v2293_v6 = vpop.eup %2292 }
0x1b48   :  { %v2682_v7 = vmul.f32 %v2293_v6, %v1269_v3 }
0x1b4a   :  { %1281 = vrot.lane.b32.xlu1 %v2682_v7, %s2392_s17 }
0x1bbc   :  { %v1282_v0 = vpop.permute.xlu1 %1281 }
0x1bbd   :  { %1896 = vmatmul.mubr.msk.f32.vlgmr.msra.gmra.mrb[10].mxu1 %vm989_vm3, %v1282_v0 }
0x1bbe   :  { %2160 = vmatpush1.bf16.msra.mxu1 %v2608_v55  ;;  %1541 = vmatprep.mubr.f32.mxu1 %v2390_v1 }
0x1bbf   :  { %2162 = vmatprep.subr.bf16.mxu1 %v2610_v56 }
0x1bc2   :  { %2164 = vmatpush1.bf16.msra.mxu1 %v2615_v61 }
0x1bc3   :  { %2166 = vmatprep.subr.bf16.mxu1 %v2619_v62 }
0x1bc6   :  { %2168 = vmatpush1.bf16.msra.mxu1 %v2623_v4 }
0x1bc7   :  { %2170 = vmatprep.subr.bf16.mxu1 %v2627_v5 }
0x1bca   :  { %2172 = vmatpush1.bf16.msra.mxu1 %v2631_v8 }
0x1bcb   :  { %2190 = vmatprep.subr.bf16.mxu1 %v2606_v52 }
0x1c90   :  { %v1351_v9 = vpop.f32.mrb[10].mxu1 }
0x1c91   :  { %v1356_v11 = vadd.f32 %v1351_v9, %v2656_v23  ;;  %v1353_v12 = vpop.f32.mrb[11].mxu1 }
0x1c92   :  { %v1357_v15 = vadd.f32 %v1353_v12, %v2660_v25 }
0x1c93   :  { %v1358_v14 = vmul.f32 0.5, %v1356_v11 }
0x1c94   :  { %v1359_v22 = vmul.f32 0.5, %v1357_v15 }
0x1c95   :  { %2294 = vtanh.f32 %v1358_v14 }
0x1c96   :  { %2296 = vtanh.f32 %v1357_v15 }
0x1c97   :  { %2298 = vtanh.f32 %v1359_v22 }
0x1c9f   :  { %v2295_v16 = vpop.eup %2294 }
0x1ca0   :  { %v1362_v17 = vmul.f32 0.5, %v2295_v16  ;;  %v2297_v19 = vpop.eup %2296 }
0x1ca1   :  { %v2299_v27 = vpop.eup %2298 }
0x1ca2   :  { %v1364_v18 = vadd.f32 0.5, %v1362_v17  ;;  %v1363_v28 = vmul.f32 0.5, %v2299_v27 }
0x1ca4   :  { %v1368_v21 = vmul.f32 %v2297_v19, %v1364_v18  ;;  %v1367_v24 = vmul.f32 %v1364_v18, %v1277_v60  ;;  %v1365_v29 = vadd.f32 0.5, %v1363_v28 }
0x1ca6   :  { %1370 = vrot.lane.b32.xlu0 %v1368_v21, %s2392_s17 }
0x1d18   :  { %v1371_v52 = vpop.permute.xlu0 %1370 }
0x1d19   :  { %v1373_v26 = vadd.f32 %v1371_v52, %v1367_v24 }
0x1d1b   :  { %2300 = vtanh.f32 %v1373_v26 }
0x1d25   :  { %v2301_v30 = vpop.eup %2300 }
0x1d26   :  { %v2699_v31 = vmul.f32 %v2301_v30, %v1365_v29 }
0x1d28   :  { %1377 = vrot.lane.b32.xlu1 %v2699_v31, %s2392_s17 }
0x1d9a   :  { %v1378_v32 = vpop.permute.xlu1 %1377 }
0x1d9b   :  { %1897 = vmatmul.mubr.msk.f32.vlgmr.msra.gmra.mrb[12].mxu0 %vm989_vm3, %v1378_v32 }
0x1d9c   :  { %2176 = vmatpush1.bf16.msra.mxu0 %v2608_v55  ;;  %1637 = vmatprep.mubr.f32.mxu0 %v2390_v1 }
0x1d9d   :  { %2178 = vmatprep.subr.bf16.mxu0 %v2610_v56 }
0x1da0   :  { %2180 = vmatpush1.bf16.msra.mxu0 %v2615_v61 }
0x1da1   :  { %2182 = vmatprep.subr.bf16.mxu0 %v2619_v62 }
0x1da4   :  { %2184 = vmatpush1.bf16.msra.mxu0 %v2623_v4 }
0x1da5   :  { %2186 = vmatprep.subr.bf16.mxu0 %v2627_v5 }
0x1da8   :  { %2188 = vmatpush1.bf16.msra.mxu0 %v2631_v8 }
0x1e6e   :  { %v1447_v35 = vpop.f32.mrb[12].mxu0 }
0x1e6f   :  { %v1452_v36 = vadd.f32 %v1447_v35, %v2656_v23  ;;  %v1449_v34 = vpop.f32.mrb[13].mxu0 }
0x1e70   :  { %v1453_v37 = vadd.f32 %v1449_v34, %v2660_v25  ;;  %v956_v34 = vld [vmem:[#allocation4 + $0x2] ss:$0 sm:$0xff] }
0x1e71   :  { %v1454_v33 = vmul.f32 0.5, %v1452_v36 }
0x1e72   :  { %v1455_v44 = vmul.f32 0.5, %v1453_v37 }
0x1e73   :  { %2302 = vtanh.f32 %v1454_v33 }
0x1e74   :  { %2304 = vtanh.f32 %v1453_v37 }
0x1e75   :  { %2306 = vtanh.f32 %v1455_v44 }
0x1e7d   :  { %v2303_v38 = vpop.eup %2302 }
0x1e7e   :  { %v1458_v39 = vmul.f32 0.5, %v2303_v38  ;;  %v2305_v41 = vpop.eup %2304 }
0x1e7f   :  { %v2307_v48 = vpop.eup %2306 }
0x1e80   :  { %v1460_v40 = vadd.f32 0.5, %v1458_v39  ;;  %v1459_v49 = vmul.f32 0.5, %v2307_v48 }
0x1e82   :  { %v1464_v42 = vmul.f32 %v2305_v41, %v1460_v40  ;;  %v1463_v45 = vmul.f32 %v1460_v40, %v1373_v26  ;;  %v1461_v50 = vadd.f32 0.5, %v1459_v49 }
0x1e84   :  { %1466 = vrot.lane.b32.xlu0 %v1464_v42, %s2392_s17 }
0x1ef6   :  { %v1467_v46 = vpop.permute.xlu0 %1466 }
0x1ef7   :  { %v1469_v47 = vadd.f32 %v1467_v46, %v1463_v45 }
0x1ef9   :  { %2308 = vtanh.f32 %v1469_v47 }
0x1f03   :  { %v2309_v51 = vpop.eup %2308 }
0x1f04   :  { %v2715_v10 = vmul.f32 %v2309_v51, %v1461_v50 }
0x1f06   :  { %1473 = vrot.lane.b32.xlu1 %v2715_v10, %s2392_s17 }
0x1f78   :  { %v1474_v13 = vpop.permute.xlu1 %1473 }
0x1f79   :  { %1898 = vmatmul.mubr.msk.f32.vlgmr.msra.gmra.mrb[12].mxu1 %vm989_vm3, %v1474_v13 }
0x1f7a   :  { %2192 = vmatpush1.bf16.msra.mxu1 %v2608_v55  ;;  %1733 = vmatprep.mubr.f32.mxu1 %v2390_v1 }
0x1f7b   :  { %2194 = vmatprep.subr.bf16.mxu1 %v2610_v56 }
0x1f7e   :  { %2196 = vmatpush1.bf16.msra.mxu1 %v2615_v61 }
0x1f7f   :  { %2198 = vmatprep.subr.bf16.mxu1 %v2619_v62 }
0x1f82   :  { %2200 = vmatpush1.bf16.msra.mxu1 %v2623_v4 }
0x1f83   :  { %2202 = vmatprep.subr.bf16.mxu1 %v2627_v5 }
0x1f86   :  { %2204 = vmatpush1.bf16.msra.mxu1 %v2631_v8 }
0x204c   :  { %v1543_v54 = vpop.f32.mrb[12].mxu1 }
0x204d   :  { %v1548_v57 = vadd.f32 %v1543_v54, %v2656_v23  ;;  %v1545_v58 = vpop.f32.mrb[13].mxu1 }
0x204e   :  { %v1549_v1 = vadd.f32 %v1545_v58, %v2660_v25 }
0x204f   :  { %v1550_v59 = vmul.f32 0.5, %v1548_v57 }
0x2050   :  { %v1551_v4 = vmul.f32 0.5, %v1549_v1 }
0x2051   :  { %2310 = vtanh.f32 %v1550_v59 }
0x2052   :  { %2312 = vtanh.f32 %v1549_v1 }
0x2053   :  { %2314 = vtanh.f32 %v1551_v4 }
0x205b   :  { %v2311_v55 = vpop.eup %2310 }
0x205c   :  { %v1554_v56 = vmul.f32 0.5, %v2311_v55  ;;  %v2313_v60 = vpop.eup %2312 }
0x205d   :  { %v2315_v2 = vpop.eup %2314 }
0x205e   :  { %v1556_v61 = vadd.f32 0.5, %v1554_v56  ;;  %v1555_v3 = vmul.f32 0.5, %v2315_v2 }
0x2060   :  { %v1560_v62 = vmul.f32 %v2313_v60, %v1556_v61  ;;  %v1559_v5 = vmul.f32 %v1556_v61, %v1469_v47  ;;  %v1557_v6 = vadd.f32 0.5, %v1555_v3 }
0x2062   :  { %1562 = vrot.lane.b32.xlu0 %v1560_v62, %s2392_s17 }
0x20d4   :  { %v1563_v8 = vpop.permute.xlu0 %1562 }
0x20d5   :  { %v1565_v63 = vadd.f32 %v1563_v8, %v1559_v5 }
0x20d7   :  { %2316 = vtanh.f32 %v1565_v63 }
0x20e1   :  { %v2317_v0 = vpop.eup %2316 }
0x20e2   :  { %v1567_v9 = vmul.f32 %v2317_v0, %v1557_v6 }
0x20e4   :  { %1569 = vrot.lane.b32.xlu1 %v1567_v9, %s2392_s17 }
0x2156   :  { %v1570_v11 = vpop.permute.xlu1 %1569 }
0x2157   :  { %1899 = vmatmul.mubr.msk.f32.vlgmr.msra.gmra.mrb[14].mxu0 %vm989_vm3, %v1570_v11 }
0x222a   :  { %v1639_v12 = vpop.f32.mrb[14].mxu0 }
0x222b   :  { %v1644_v14 = vadd.f32 %v1639_v12, %v2656_v23  ;;  %v1641_v15 = vpop.f32.mrb[15].mxu0 }
0x222c   :  { %v1645_v17 = vadd.f32 %v1641_v15, %v2660_v25 }
0x222d   :  { %v1646_v16 = vmul.f32 0.5, %v1644_v14 }
0x222e   :  { %v1647_v52 = vmul.f32 0.5, %v1645_v17 }
0x222f   :  { %2318 = vtanh.f32 %v1646_v16 }
0x2230   :  { %2320 = vtanh.f32 %v1645_v17 }
0x2231   :  { %2322 = vtanh.f32 %v1647_v52 }
0x2239   :  { %v2319_v18 = vpop.eup %2318 }
0x223a   :  { %v1650_v19 = vmul.f32 0.5, %v2319_v18  ;;  %v2321_v22 = vpop.eup %2320 }
0x223b   :  { %v2323_v29 = vpop.eup %2322 }
0x223c   :  { %v1652_v21 = vadd.f32 0.5, %v1650_v19  ;;  %v1651_v30 = vmul.f32 0.5, %v2323_v29 }
0x223e   :  { %v1656_v24 = vmul.f32 %v2321_v22, %v1652_v21  ;;  %v1655_v26 = vmul.f32 %v1652_v21, %v1565_v63  ;;  %v1653_v32 = vadd.f32 0.5, %v1651_v30 }
0x2240   :  { %1658 = vrot.lane.b32.xlu0 %v1656_v24, %s2392_s17 }
0x22b2   :  { %v1659_v27 = vpop.permute.xlu0 %1658 }
0x22b3   :  { %v1661_v28 = vadd.f32 %v1659_v27, %v1655_v26 }
0x22b5   :  { %2324 = vtanh.f32 %v1661_v28 }
0x22bf   :  { %v2325_v35 = vpop.eup %2324 }
0x22c0   :  { %v1663_v36 = vmul.f32 %v2325_v35, %v1653_v32 }
0x22c2   :  { %1665 = vrot.lane.b32.xlu1 %v1663_v36, %s2392_s17 }
0x22c6   :  { %1761 = vrot.lane.b32.xlu1 %v956_v34, %s2392_s17 }
0x2334   :  { %v1666_v33 = vpop.permute.xlu1 %1665 }
0x2335   :  { %1900 = vmatmul.mubr.msk.f32.vlgmr.msra.gmra.mrb[14].mxu1 %vm989_vm3, %v1666_v33 }
0x2338   :  { %v1762_v37 = vpop.permute.xlu1 %1761 }
0x2339   :  { %v1765_v38 = vmul.f32 %v1762_v37, %v2665_v43  ;;  %v1767_v39 = vmul.f32 %v1762_v37, %v2699_v31  ;;  %v1769_v40 = vmul.f32 %v1762_v37, %v1567_v9  ;;  %v1764_v31 = vmul.f32 %v1762_v37, %v2640_v20 }
0x233a   :  { %v1766_v51 = vmul.f32 %v1762_v37, %v2682_v7 }
0x233b   :  { %1782 = vrot.lane.b32.xlu1 %v1765_v38, %s2392_s17 }
0x233f   :  { %1786 = vrot.lane.b32.xlu1 %v1767_v39, %s2392_s17 }
0x2343   :  { %1790 = vrot.lane.b32.xlu1 %v1769_v40, %s2392_s17 }
0x23ad   :  { %v1783_v59 = vpop.permute.xlu1 %1782 }
0x23ae   :  { %v1808_v6 = vsel %vm1804_vm4, %v1783_v59, 0.0 }
0x23b1   :  { %v1787_v55 = vpop.permute.xlu1 %1786 }
0x23b2   :  { %v1814_v4 = vsel %vm1804_vm4, %v1787_v55, 0.0 }
0x23b5   :  { %v1791_v5 = vpop.permute.xlu1 %1790 }
0x23b6   :  { %v1820_v2 = vsel %vm1804_vm4, %v1791_v5, 0.0 }
0x2408   :  { %v1735_v41 = vpop.f32.mrb[14].mxu1 }
0x2409   :  { %v1740_v42 = vadd.f32 %v1735_v41, %v2656_v23  ;;  %v1737_v44 = vpop.f32.mrb[15].mxu1  ;;  %v1768_v23 = vmul.f32 %v1762_v37, %v2715_v10 }
0x240a   :  { %v1741_v46 = vadd.f32 %v1737_v44, %v2660_v25  ;;  %v1770_v25 = vmul.f32 %v1762_v37, %v1663_v36 }
0x240b   :  { %v1742_v45 = vmul.f32 0.5, %v1740_v42 }
0x240c   :  { %v1743_v13 = vmul.f32 0.5, %v1741_v46 }
0x240d   :  { %2326 = vtanh.f32 %v1742_v45 }
0x240e   :  { %2328 = vtanh.f32 %v1741_v46 }
0x240f   :  { %2330 = vtanh.f32 %v1743_v13 }
0x2417   :  { %v2327_v47 = vpop.eup %2326 }
0x2418   :  { %v1746_v43 = vmul.f32 0.5, %v2327_v47  ;;  %v2329_v49 = vpop.eup %2328 }
0x2419   :  { %v2331_v1 = vpop.eup %2330 }
0x241a   :  { %v1748_v48 = vadd.f32 0.5, %v1746_v43  ;;  %v1747_v10 = vmul.f32 0.5, %v2331_v1 }
0x241c   :  { %v1752_v50 = vmul.f32 %v2329_v49, %v1748_v48  ;;  %v1751_v54 = vmul.f32 %v1748_v48, %v1661_v28  ;;  %v1749_v60 = vadd.f32 0.5, %v1747_v10 }
0x241e   :  { %1754 = vrot.lane.b32.xlu0 %v1752_v50, %s2392_s17 }
0x2422   :  { %1780 = vrot.lane.b32.xlu0 %v1764_v31, %s2392_s17 }
0x2426   :  { %1784 = vrot.lane.b32.xlu0 %v1766_v51, %s2392_s17 }
0x242a   :  { %1788 = vrot.lane.b32.xlu0 %v1768_v23, %s2392_s17 }
0x242e   :  { %1792 = vrot.lane.b32.xlu0 %v1770_v25, %s2392_s17 }
0x2490   :  { %v1755_v57 = vpop.permute.xlu0 %1754 }
0x2491   :  { %v1757_v58 = vadd.f32 %v1755_v57, %v1751_v54 }
0x2493   :  { %2332 = vtanh.f32 %v1757_v58 }
0x2494   :  { %v1781_v20 = vpop.permute.xlu0 %1780 }
0x2495   :  { %v1805_v7 = vsel %vm1804_vm4, %v1781_v20, 0.0 }
0x2496   :  { %1806 = vadd.xlane.f32.xlu0 %v1805_v7 }
0x2498   :  { %v1785_v56 = vpop.permute.xlu0 %1784 }
0x2499   :  { %v1811_v61 = vsel %vm1804_vm4, %v1785_v56, 0.0 }
0x249a   :  { %1812 = vadd.xlane.f32.xlu0 %v1811_v61 }
0x249c   :  { %v1789_v3 = vpop.permute.xlu0 %1788 }
0x249d   :  { %v2333_v62 = vpop.eup %2332  ;;  %v1817_v0 = vsel %vm1804_vm4, %v1789_v3, 0.0 }
0x249e   :  { %1815 = vadd.xlane.f32.xlu0 %v1814_v4  ;;  %v1759_v8 = vmul.f32 %v2333_v62, %v1749_v60 }
0x24a0   :  { %v1771_v63 = vmul.f32 %v1762_v37, %v1759_v8  ;;  %v1793_v9 = vpop.permute.xlu0 %1792 }
0x24a1   :  { %v1823_v11 = vsel %vm1804_vm4, %v1793_v9, 0.0 }
0x24a2   :  { %1794 = vrot.lane.b32.xlu1 %v1771_v63, %s2392_s17  ;;  %1821 = vadd.xlane.f32.xlu0 %v1820_v2 }
0x24c6   :  { %1809 = vadd.xlane.f32.xlu1 %v1808_v6 }
0x24ca   :  { %1818 = vadd.xlane.f32.xlu1 %v1817_v0 }
0x24ce   :  { %1824 = vadd.xlane.f32.xlu1 %v1823_v11 }
0x2514   :  { %v1795_v12 = vpop.permute.xlu1 %1794 }
0x2515   :  { %v1826_v14 = vsel %vm1804_vm4, %v1795_v12, 0.0 }
0x2516   :  { %1827 = vadd.xlane.f32.xlu0 %v1826_v14 }
0x2523   :  { %v1807_v15 = vpop.xlane.xlu0 %1806 }
0x2524   :  { %v1829_v16 = vadd.f32 %v1807_v15, %v2582_v53 }
0x2526   :  { %1845 = vrot.lane.b32.xlu1 %v1829_v16, %s2396_s9 }
0x2527   :  { %v1813_v17 = vpop.xlane.xlu0 %1812 }
0x2528   :  { %v1831_v18 = vadd.f32 %v1813_v17, %v2582_v53 }
0x252a   :  { %1849 = vrot.lane.b32.xlu1 %v1831_v18, %s2396_s9 }
0x252b   :  { %v1816_v19 = vpop.xlane.xlu0 %1815 }
0x252c   :  { %v1832_v21 = vadd.f32 %v1816_v19, %v2582_v53 }
0x252e   :  { %1851 = vrot.lane.b32.xlu1 %v1832_v21, %s2396_s9 }
0x252f   :  { %v1822_v22 = vpop.xlane.xlu0 %1821 }
0x2530   :  { %v1834_v24 = vadd.f32 %v1822_v22, %v2582_v53 }
0x2532   :  { %1855 = vrot.lane.b32.xlu1 %v1834_v24, %s2396_s9 }
0x2553   :  { %v1810_v52 = vpop.xlane.xlu1 %1809 }
0x2554   :  { %v1830_v26 = vadd.f32 %v1810_v52, %v2582_v53 }
0x2556   :  { %1847 = vrot.lane.b32.xlu0 %v1830_v26, %s2396_s9 }
0x2557   :  { %v1819_v27 = vpop.xlane.xlu1 %1818 }
0x2558   :  { %v1833_v28 = vadd.f32 %v1819_v27, %v2582_v53 }
0x255a   :  { %1853 = vrot.lane.b32.xlu0 %v1833_v28, %s2396_s9 }
0x255b   :  { %v1825_v29 = vpop.xlane.xlu1 %1824 }
0x255c   :  { %v1835_v30 = vadd.f32 %v1825_v29, %v2582_v53 }
0x255e   :  { %1857 = vrot.lane.b32.xlu0 %v1835_v30, %s2396_s9 }
0x2598   :  { %v1846_v32 = vpop.permute.xlu1 %1845 }
0x2599   :  { %1870 = vst.msk [vmem:[%s2815_s4] sm:$0x3] %vm1869_vm5, %v1846_v32 }
0x259c   :  { %v1850_v35 = vpop.permute.xlu1 %1849 }
0x259d   :  { %1872 = vst.msk [vmem:[%s2815_s4 + $0x4] sm:$0x3] %vm1869_vm5, %v1850_v35 }
0x25a0   :  { %v1852_v36 = vpop.permute.xlu1 %1851 }
0x25a1   :  { %1873 = vst.msk [vmem:[%s2815_s4 + $0x6] sm:$0x3] %vm1869_vm5, %v1852_v36 }
0x25a3   :  { %v1828_v34 = vpop.xlane.xlu0 %1827 }
0x25a4   :  { %v1836_v33 = vadd.f32 %v1828_v34, %v2582_v53  ;;  %v1856_v37 = vpop.permute.xlu1 %1855 }
0x25a5   :  { %1875 = vst.msk [vmem:[%s2815_s4 + $0xa] sm:$0x3] %vm1869_vm5, %v1856_v37 }
0x25a6   :  { %1859 = vrot.lane.b32.xlu1 %v1836_v33, %s2396_s9 }
0x25c8   :  { %v1848_v38 = vpop.permute.xlu0 %1847 }
0x25c9   :  { %1871 = vst.msk [vmem:[%s2815_s4 + $0x2] sm:$0x3] %vm1869_vm5, %v1848_v38 }
0x25cc   :  { %v1854_v39 = vpop.permute.xlu0 %1853 }
0x25cd   :  { %1874 = vst.msk [vmem:[%s2815_s4 + $0x8] sm:$0x3] %vm1869_vm5, %v1854_v39 }
0x25d0   :  { %v1858_v53 = vpop.permute.xlu0 %1857 }
0x25d1   :  { %1876 = vst.msk [vmem:[%s2815_s4 + $0xc] sm:$0x3] %vm1869_vm5, %v1858_v53 }
0x2618   :  { %v1860_v40 = vpop.permute.xlu1 %1859 }
0x2619   :  { %1877 = vst.msk [vmem:[%s2815_s4 + $0xe] sm:$0x3] %vm1869_vm5, %v1860_v40 }
0x261a   :  { %1882 = vsyncpa [#allocation3], 1 }
0x261b   :  { %1883 = vsyncpa [#allocation5], 1 }

</bundles_post_ra>
